<compile_context>
chip_gen: v6e
topology: v6e:2x2x1
jax: 0.10.0
libtpu: 0.0.40
codegen_flags: <defaults>
</compile_context>

<pallas_src>
import numpy as np

import jax
import jax.numpy as jnp
from jax.experimental import pallas as pl
from jax.experimental.pallas import tpu as pltpu


# ----------------------------- fused Pallas kernel ---------------------------

def _fused_input_processor_kernel(
        patches_ref, state_ref, comm_ref,
        s2_ref, s3_ref,
        w1_ref, w23_ref, wfi_ref, wfs_ref, p_ref, rows_ref,
        o_ref):
    f32 = jnp.float32
    bf16 = jnp.bfloat16

    # Packed row constants: 0:b1 1:b2 2:b3 3:bf 4:ln_w 5:ln_b 6:lane_floor
    b1 = rows_ref[0:1, 0:32]
    b2 = rows_ref[1:2, 0:32]
    b3 = rows_ref[2:3, 0:32]
    bf = rows_ref[3:4, :]
    lnw = rows_ref[4:5, :]
    lnb = rows_ref[5:6, :]
    floor = rows_ref[6:7, :]

    # conv1: im2col hoisted to the wrapper -> single bf16 MXU matmul.
    h = jnp.maximum(
        jnp.dot(patches_ref[...], w1_ref[...], preferred_element_type=f32) + b1,
        0.0)                                                     # (A*49, 32) f32

    def conv_relu(h_in, s_ref, w_base, b):
        # out = ReLU( b + sum_tap  S_tap @ h @ W_tap ); S_tap does the im2col
        # row gather on the MXU, keeping every tensor a plain 2-D tile.
        hb = h_in.astype(bf16)
        acc = jnp.broadcast_to(b, (s_ref.shape[1], 32))          # bias-init accumulate
        for t in range(s_ref.shape[0]):
            g = jnp.dot(s_ref[t], hb, preferred_element_type=f32)          # (Rout, Cin)
            acc = acc + jnp.dot(g.astype(bf16), w23_ref[w_base + t],
                                preferred_element_type=f32)                # (Rout, Cout)
        return jnp.maximum(acc, 0.0)

    h = conv_relu(h, s2_ref, 0, b2)          # (A*9, 32)
    h = conv_relu(h, s3_ref, 9, b3)          # (A, 32)  -- 1x1 spatial == flatten

    # img_fc and state_fc fused into one lane-dense (A, 128) tile via
    # block-diagonal weights: lanes [0:64]=img, [64:128]=state.
    y = (jnp.dot(h, wfi_ref[...], preferred_element_type=f32)
         + jnp.dot(state_ref[...], wfs_ref[...], preferred_element_type=f32)
         + bf)
    # ReLU on img lanes only: floor = 0.0 on lanes 0:64, -1e30 on lanes 64:128.
    y = jnp.maximum(y, floor)

    # Two LayerNorms (64-lane groups) on the single (A, 128) tile via one
    # precomputed 128x128 group projector P (mu = y@P, var = (xc*xc)@P);
    # biased variance + eps=1e-5 matches torch.nn.LayerNorm.
    mu = jnp.dot(y, p_ref[...], preferred_element_type=f32)
    xc = y - mu
    var = jnp.dot(xc * xc, p_ref[...], preferred_element_type=f32)
    normed = xc * jax.lax.rsqrt(var + 1e-5) * lnw + lnb

    # Lane-dense (A, 256) output slab: [img LN | state LN | comm | zero pad].
    # Both stores are 128-lane-aligned full-width writes.
    o_ref[:, 0:128] = normed
    o_ref[:, 128:256] = comm_ref[...]


# ----------------------------- constant builders -----------------------------

def _conv_out(s):
    return (s - 3) // 2 + 1


def _conv_tap_selectors(num_agents, h, w, oh, ow, ksize=3, stride=2):
    """0/1 matrices S_tap: (K*K, A*OH*OW, A*H*W).  Row r=(a,oh,ow) of S_tap picks
    input row (a, stride*oh+kh, stride*ow+kw); agents are folded into rows."""
    r_out = num_agents * oh * ow
    r_in = num_agents * h * w
    sel = np.zeros((ksize * ksize, r_out, r_in), np.float32)
    for kh in range(ksize):
        for kw in range(ksize):
            t = kh * ksize + kw
            for a in range(num_agents):
                for i in range(oh):
                    for j in range(ow):
                        r = (a * oh + i) * ow + j
                        c = (a * h + stride * i + kh) * w + (stride * j + kw)
                        sel[t, r, c] = 1.0
    return sel


def _im2col_nhwc(x, k=3, s=2):
    """(N,H,W,C) -> (N*OH*OW, k*k*C) patches; lane order (kh,kw,c) matches
    conv_w.reshape(k*k*C, Cout)."""
    N, H, W, C = x.shape
    OH = (H - k) // s + 1
    OW = (W - k) // s + 1
    cols = []
    for kh in range(k):
        for kw in range(k):
            cols.append(x[:, kh:kh + s * (OH - 1) + 1:s,
                             kw:kw + s * (OW - 1) + 1:s, :])
    return jnp.concatenate(cols, axis=-1).reshape(N * OH * OW, k * k * C)


# ----------------------------- parameters ------------------------------------

def init_params(key, pov_shape=(16, 16, 3), env_act_dim=7, last_fc_dim=64):
    H, W, C = pov_shape
    ks = jax.random.split(key, 16)

    def dense(k, fan_in, shape):
        return jax.random.normal(k, shape, jnp.float32) / jnp.sqrt(jnp.float32(fan_in))

    def small(k, n):
        return 0.1 * jax.random.normal(k, (n,), jnp.float32)

    oh = _conv_out(_conv_out(_conv_out(H)))
    ow = _conv_out(_conv_out(_conv_out(W)))
    flat = oh * ow * 32
    state_feat_dim = env_act_dim + 2   # one-hot env act + (x, y) selfpos (Box case)

    # Biases / LN params are nonzero so the numerical check catches placement bugs.
    return {
        "conv1_w": dense(ks[0], 3 * 3 * C, (3, 3, C, 32)),
        "conv1_b": small(ks[1], 32),
        "conv2_w": dense(ks[2], 3 * 3 * 32, (3, 3, 32, 32)),
        "conv2_b": small(ks[3], 32),
        "conv3_w": dense(ks[4], 3 * 3 * 32, (3, 3, 32, 32)),
        "conv3_b": small(ks[5], 32),
        "img_fc_w": dense(ks[6], flat, (flat, last_fc_dim)),
        "img_fc_b": small(ks[7], last_fc_dim),
        "img_ln_w": 1.0 + small(ks[8], last_fc_dim),
        "img_ln_b": small(ks[9], last_fc_dim),
        "state_fc_w": dense(ks[10], state_feat_dim, (state_feat_dim, 64)),
        "state_fc_b": small(ks[11], 64),
        "state_ln_w": 1.0 + small(ks[12], 64),
        "state_ln_b": small(ks[13], 64),
    }


# ----------------------------- forward factory --------------------------------

def make_input_processor(*, num_agents, pov_shape=(16, 16, 3), env_act_dim=7,
                         comm_feat_len=10, last_fc_dim=64):
    H, W, C = pov_shape
    A = num_agents
    OH1, OW1 = _conv_out(H), _conv_out(W)
    OH2, OW2 = _conv_out(OH1), _conv_out(OW1)
    OH3, OW3 = _conv_out(OH2), _conv_out(OW2)
    # With a 16x16 pov the conv stack collapses to 1x1 spatial, so the NHWC vs
    # NCHW flatten-order question is moot; the fused kernel assumes this.
    assert OH3 == 1 and OW3 == 1, "fused kernel assumes the conv stack ends at 1x1 spatial"
    assert last_fc_dim == 64, "LayerNorm lane grouping assumes last_fc_dim == 64"

    state_feat_dim = env_act_dim + 2
    comm_feat_dim = comm_feat_len * (num_agents - 1)
    assert comm_feat_dim <= 128
    feat_dim = last_fc_dim + 64 + comm_feat_dim

    # Precomputed constants (captured by the jit; built once with numpy).
    # Selectors are exact in bf16 (0/1 values); total << 64 KiB at A=2.
    s2 = jnp.asarray(_conv_tap_selectors(A, OH1, OW1, OH2, OW2), jnp.bfloat16)  # (9, A*9, A*49)
    s3 = jnp.asarray(_conv_tap_selectors(A, OH2, OW2, OH3, OW3), jnp.bfloat16)  # (9, A,   A*9)

    p_np = np.zeros((128, 128), np.float32)
    p_np[:64, :64] = 1.0 / 64.0
    p_np[64:, 64:] = 1.0 / 64.0
    p_mat = jnp.asarray(p_np)                                                   # LN group projector

    n_inputs = 11
    fused = pl.pallas_call(
        _fused_input_processor_kernel,
        out_shape=jax.ShapeDtypeStruct((A, 256), jnp.float32),
        in_specs=[pl.BlockSpec(memory_space=pltpu.MemorySpace.VMEM)] * n_inputs,
        out_specs=pl.BlockSpec(memory_space=pltpu.MemorySpace.VMEM),
        cost_estimate=pl.CostEstimate(flops=2_500_000, transcendentals=256,
                                      bytes_accessed=250_000),
    )

    @jax.jit
    def forward(params, inputs, comm):
        for i in range(A):
            assert inputs[f"agent_{i}"]["pov"].shape == (1, H, W, C)

        # concat pov across agents along batch dim (matches torch.cat(pov, dim=0)),
        # then hoist conv1's im2col into XLA: one (A*OH1*OW1, 9*C) patch matrix.
        pov = jnp.concatenate(
            [inputs[f"agent_{i}"]["pov"] for i in range(A)], axis=0).astype(jnp.float32)
        patches = _im2col_nhwc(pov).astype(jnp.bfloat16)              # (A*49, 27)

        env_act = jnp.stack(
            [inputs[f"agent_{i}"]["self_env_act"] for i in range(A)]).astype(jnp.int32)
        env_oh = jax.nn.one_hot(env_act, env_act_dim, dtype=jnp.float32)
        selfpos = jnp.stack(
            [inputs[f"agent_{i}"]["selfpos"] for i in range(A)]).astype(jnp.float32)
        state_in = jnp.concatenate([env_oh, selfpos], axis=-1)        # (A, state_feat_dim)

        comm_pad = jnp.zeros((A, 128), jnp.float32)
        if comm is not None and comm_feat_dim > 0:
            comm_pad = comm_pad.at[:, :comm_feat_dim].set(
                comm.reshape(A, comm_feat_dim).astype(jnp.float32))

        # Conv weights: conv1 as a (9*C, 32) matrix; conv2/conv3 per-tap stacked
        # into one (18, 32, 32) array (tap order kh*3+kw matches the selectors).
        w1 = params["conv1_w"].reshape(9 * C, 32).astype(jnp.bfloat16)
        w23 = jnp.concatenate([params["conv2_w"].reshape(9, 32, 32),
                               params["conv3_w"].reshape(9, 32, 32)],
                              axis=0).astype(jnp.bfloat16)

        # Block-diagonal fused fc weights: lanes [0:64] img_fc, [64:128] state_fc.
        wfi = jnp.zeros((32, 128), jnp.float32).at[:, :64].set(params["img_fc_w"])
        wfs = jnp.zeros((state_feat_dim, 128), jnp.float32).at[:, 64:].set(params["state_fc_w"])

        # All tiny row constants packed into a single (8, 128) VMEM input.
        rows = jnp.zeros((8, 128), jnp.float32)
        rows = rows.at[0, :32].set(params["conv1_b"])
        rows = rows.at[1, :32].set(params["conv2_b"])
        rows = rows.at[2, :32].set(params["conv3_b"])
        rows = rows.at[3, :64].set(params["img_fc_b"])
        rows = rows.at[3, 64:].set(params["state_fc_b"])
        rows = rows.at[4, :64].set(params["img_ln_w"])
        rows = rows.at[4, 64:].set(params["state_ln_w"])
        rows = rows.at[5, :64].set(params["img_ln_b"])
        rows = rows.at[5, 64:].set(params["state_ln_b"])
        rows = rows.at[6, 64:].set(-1e30)   # lane_floor: ReLU img lanes, passthrough state lanes

        out = fused(patches, state_in, comm_pad,
                    s2, s3, w1, w23, wfi, wfs, p_mat, rows)           # (A, 256)

        feat = out[:, :feat_dim]
        # per-agent list [img_ln | state_ln | comm], matching the torch module
        return [feat[i:i + 1] for i in range(A)]

    return forward, feat_dim


# ----------------------------- pure-JAX reference ----------------------------

def _reference_forward(params, inputs, comm, *, num_agents, env_act_dim, comm_feat_dim):
    """Same math, plain jnp (no Pallas); used to validate the fused kernel."""
    def conv_relu(x, w, b):
        KH, KW, Ci, Co = w.shape
        p = _im2col_nhwc(x, KH, 2)
        N, H, W, _ = x.shape
        OH = (H - KH) // 2 + 1
        OW = (W - KW) // 2 + 1
        y = jnp.maximum(p @ w.reshape(KH * KW * Ci, Co) + b, 0.0)
        return y.reshape(N, OH, OW, Co)

    def layer_norm(x, w, b):
        mu = jnp.mean(x, axis=-1, keepdims=True)
        xc = x - mu
        var = jnp.mean(xc * xc, axis=-1, keepdims=True)
        return xc * jax.lax.rsqrt(var + 1e-5) * w + b

    pov = jnp.concatenate(
        [inputs[f"agent_{i}"]["pov"] for i in range(num_agents)], axis=0).astype(jnp.float32)
    x = conv_relu(pov, params["conv1_w"], params["conv1_b"])
    x = conv_relu(x, params["conv2_w"], params["conv2_b"])
    x = conv_relu(x, params["conv3_w"], params["conv3_b"])
    x = x.reshape(num_agents, -1)
    x = jnp.maximum(x @ params["img_fc_w"] + params["img_fc_b"], 0.0)
    img_feat = layer_norm(x, params["img_ln_w"], params["img_ln_b"])

    env_act = jnp.stack(
        [inputs[f"agent_{i}"]["self_env_act"] for i in range(num_agents)]).astype(jnp.int32)
    env_oh = jax.nn.one_hot(env_act, env_act_dim, dtype=jnp.float32)
    selfpos = jnp.stack(
        [inputs[f"agent_{i}"]["selfpos"] for i in range(num_agents)]).astype(jnp.float32)
    state_in = jnp.concatenate([env_oh, selfpos], axis=-1)
    state = state_in @ params["state_fc_w"] + params["state_fc_b"]
    state_feat = layer_norm(state, params["state_ln_w"], params["state_ln_b"])

    outs = []
    for i in range(num_agents):
        f = jnp.concatenate([img_feat[i:i + 1], state_feat[i:i + 1]], axis=-1)
        if comm is not None:
            f = jnp.concatenate([f, comm[i].reshape(1, comm_feat_dim)], axis=-1)
        outs.append(f)
    return outs


# ----------------------------- main -------------------------------------------

if __name__ == "__main__":
    num_agents = 2
    H, W, C = 16, 16, 3
    env_act_dim = 7
    comm_feat_len = 10
    last_fc_dim = 64
    comm_feat_dim = comm_feat_len * (num_agents - 1)

    key = jax.random.PRNGKey(0)
    pk, ik = jax.random.split(key)
    params = init_params(pk, pov_shape=(H, W, C), env_act_dim=env_act_dim,
                         last_fc_dim=last_fc_dim)

    iks = jax.random.split(ik, 4 * num_agents)
    inputs = {}
    for i in range(num_agents):
        inputs[f"agent_{i}"] = {
            "pov": jax.random.uniform(iks[4 * i], (1, H, W, C), jnp.float32),
            "self_env_act": jax.random.randint(iks[4 * i + 1], (), 0, env_act_dim),
            "selfpos": jax.random.randint(iks[4 * i + 2], (2,), 0, 16),
        }
    comm = jax.random.normal(jax.random.PRNGKey(1),
                             (num_agents, comm_feat_dim), jnp.float32)

    forward, feat_dim = make_input_processor(
        num_agents=num_agents, pov_shape=(H, W, C), env_act_dim=env_act_dim,
        comm_feat_len=comm_feat_len, last_fc_dim=last_fc_dim)

    cat_feat = forward(params, inputs, comm)
    cat_feat = [jax.block_until_ready(f) for f in cat_feat]

    # validate against a full-precision pure-JAX reference
    with jax.default_matmul_precision("highest"):
        ref_feat = _reference_forward(params, inputs, comm, num_agents=num_agents,
                                      env_act_dim=env_act_dim, comm_feat_dim=comm_feat_dim)
        ref_feat = [jax.block_until_ready(f) for f in ref_feat]

    expected_feat_dim = last_fc_dim + 64 + comm_feat_dim      # 64 + 64 + 10 = 138
    assert feat_dim == expected_feat_dim
    assert len(cat_feat) == num_agents
    # Tolerance is sized for the explicit bf16 MXU conv path (per perf review):
    # bf16 rounding through 4 matmul stages + LN rescale is ~1e-2 worst case,
    # while structural bugs (tap order / bias placement, now nonzero) are O(1).
    for f, r in zip(cat_feat, ref_feat):
        assert f.shape == (1, expected_feat_dim), f.shape
        assert f.dtype == jnp.float32
        assert bool(jnp.all(jnp.isfinite(f)))
        assert bool(jnp.allclose(f, r, rtol=2e-2, atol=2e-2)), \
            float(jnp.max(jnp.abs(f - r)))

    print("KERNEL_OK")
</pallas_src>

<mosaic_0001>
module attributes {stable_mosaic.version = 11 : i64} {
  func.func @_fused_input_processor_kernel(%arg0: memref<98x27xbf16, #tpu.memory_space<vmem>>, %arg1: memref<2x9xf32, #tpu.memory_space<vmem>>, %arg2: memref<2x128xf32, #tpu.memory_space<vmem>>, %arg3: memref<9x18x98xbf16, #tpu.memory_space<vmem>>, %arg4: memref<9x2x18xbf16, #tpu.memory_space<vmem>>, %arg5: memref<27x32xbf16, #tpu.memory_space<vmem>>, %arg6: memref<18x32x32xbf16, #tpu.memory_space<vmem>>, %arg7: memref<32x128xf32, #tpu.memory_space<vmem>>, %arg8: memref<9x128xf32, #tpu.memory_space<vmem>>, %arg9: memref<128x128xf32, #tpu.memory_space<vmem>>, %arg10: memref<8x128xf32, #tpu.memory_space<vmem>>, %arg11: memref<2x256xf32, #tpu.memory_space<vmem>>) attributes {dimension_semantics = [], scalar_prefetch = 0 : i64, scratch_operands = 0 : i64, tpu.core_type = #tpu.core_type<tc>} {
    %c0 = arith.constant 0 : index
    %c0_0 = arith.constant 0 : index
    %0 = vector.load %arg10[%c0, %c0_0] : memref<8x128xf32, #tpu.memory_space<vmem>>, vector<1x32xf32>
    %c1 = arith.constant 1 : index
    %c0_1 = arith.constant 0 : index
    %1 = vector.load %arg10[%c1, %c0_1] : memref<8x128xf32, #tpu.memory_space<vmem>>, vector<1x32xf32>
    %c2 = arith.constant 2 : index
    %c0_2 = arith.constant 0 : index
    %2 = vector.load %arg10[%c2, %c0_2] : memref<8x128xf32, #tpu.memory_space<vmem>>, vector<1x32xf32>
    %c3 = arith.constant 3 : index
    %c0_3 = arith.constant 0 : index
    %3 = vector.load %arg10[%c3, %c0_3] : memref<8x128xf32, #tpu.memory_space<vmem>>, vector<1x128xf32>
    %c4 = arith.constant 4 : index
    %c0_4 = arith.constant 0 : index
    %4 = vector.load %arg10[%c4, %c0_4] : memref<8x128xf32, #tpu.memory_space<vmem>>, vector<1x128xf32>
    %c5 = arith.constant 5 : index
    %c0_5 = arith.constant 0 : index
    %5 = vector.load %arg10[%c5, %c0_5] : memref<8x128xf32, #tpu.memory_space<vmem>>, vector<1x128xf32>
    %c6 = arith.constant 6 : index
    %c0_6 = arith.constant 0 : index
    %6 = vector.load %arg10[%c6, %c0_6] : memref<8x128xf32, #tpu.memory_space<vmem>>, vector<1x128xf32>
    %c0_7 = arith.constant 0 : index
    %c0_8 = arith.constant 0 : index
    %7 = vector.load %arg0[%c0_7, %c0_8] : memref<98x27xbf16, #tpu.memory_space<vmem>>, vector<98x27xbf16>
    %c0_9 = arith.constant 0 : index
    %c0_10 = arith.constant 0 : index
    %8 = vector.load %arg5[%c0_9, %c0_10] : memref<27x32xbf16, #tpu.memory_space<vmem>>, vector<27x32xbf16>
    %cst = arith.constant dense<0.000000e+00> : vector<98x32xf32>
    %9 = tpu.matmul %7, %8, %cst {dimension_numbers = #tpu.dot_dimension_numbers<[1], [0], [0], [1], [0, 0, 1, 1], [], []>} : vector<98x27xbf16>, vector<27x32xbf16>, vector<98x32xf32> -> vector<98x32xf32>
    %10 = vector.broadcast %0 : vector<1x32xf32> to vector<98x32xf32>
    %11 = arith.addf %9, %10 : vector<98x32xf32>
    %cst_11 = arith.constant 0.000000e+00 : f32
    %12 = vector.broadcast %cst_11 : f32 to vector<98x32xf32>
    %13 = arith.maximumf %11, %12 : vector<98x32xf32>
    %14 = arith.truncf %13 : vector<98x32xf32> to vector<98x32xbf16>
    %15 = vector.shape_cast %1 : vector<1x32xf32> to vector<1x32xf32>
    %16 = vector.broadcast %15 : vector<1x32xf32> to vector<18x32xf32>
    %c0_12 = arith.constant 0 : index
    %c0_13 = arith.constant 0 : index
    %c0_14 = arith.constant 0 : index
    %17 = vector.load %arg3[%c0_12, %c0_13, %c0_14] : memref<9x18x98xbf16, #tpu.memory_space<vmem>>, vector<1x18x98xbf16>
    %18 = vector.shape_cast %17 : vector<1x18x98xbf16> to vector<18x98xbf16>
    %cst_15 = arith.constant dense<0.000000e+00> : vector<18x32xf32>
    %19 = tpu.matmul %18, %14, %cst_15 {dimension_numbers = #tpu.dot_dimension_numbers<[1], [0], [0], [1], [0, 0, 1, 1], [], []>} : vector<18x98xbf16>, vector<98x32xbf16>, vector<18x32xf32> -> vector<18x32xf32>
    %20 = arith.truncf %19 : vector<18x32xf32> to vector<18x32xbf16>
    %c0_16 = arith.constant 0 : index
    %c0_17 = arith.constant 0 : index
    %c0_18 = arith.constant 0 : index
    %21 = vector.load %arg6[%c0_16, %c0_17, %c0_18] : memref<18x32x32xbf16, #tpu.memory_space<vmem>>, vector<1x32x32xbf16>
    %22 = vector.shape_cast %21 : vector<1x32x32xbf16> to vector<32x32xbf16>
    %cst_19 = arith.constant dense<0.000000e+00> : vector<18x32xf32>
    %23 = tpu.matmul %20, %22, %cst_19 {dimension_numbers = #tpu.dot_dimension_numbers<[1], [0], [0], [1], [0, 0, 1, 1], [], []>} : vector<18x32xbf16>, vector<32x32xbf16>, vector<18x32xf32> -> vector<18x32xf32>
    %24 = arith.addf %16, %23 : vector<18x32xf32>
    %c1_20 = arith.constant 1 : index
    %c0_21 = arith.constant 0 : index
    %c0_22 = arith.constant 0 : index
    %25 = vector.load %arg3[%c1_20, %c0_21, %c0_22] : memref<9x18x98xbf16, #tpu.memory_space<vmem>>, vector<1x18x98xbf16>
    %26 = vector.shape_cast %25 : vector<1x18x98xbf16> to vector<18x98xbf16>
    %cst_23 = arith.constant dense<0.000000e+00> : vector<18x32xf32>
    %27 = tpu.matmul %26, %14, %cst_23 {dimension_numbers = #tpu.dot_dimension_numbers<[1], [0], [0], [1], [0, 0, 1, 1], [], []>} : vector<18x98xbf16>, vector<98x32xbf16>, vector<18x32xf32> -> vector<18x32xf32>
    %28 = arith.truncf %27 : vector<18x32xf32> to vector<18x32xbf16>
    %c1_24 = arith.constant 1 : index
    %c0_25 = arith.constant 0 : index
    %c0_26 = arith.constant 0 : index
    %29 = vector.load %arg6[%c1_24, %c0_25, %c0_26] : memref<18x32x32xbf16, #tpu.memory_space<vmem>>, vector<1x32x32xbf16>
    %30 = vector.shape_cast %29 : vector<1x32x32xbf16> to vector<32x32xbf16>
    %cst_27 = arith.constant dense<0.000000e+00> : vector<18x32xf32>
    %31 = tpu.matmul %28, %30, %cst_27 {dimension_numbers = #tpu.dot_dimension_numbers<[1], [0], [0], [1], [0, 0, 1, 1], [], []>} : vector<18x32xbf16>, vector<32x32xbf16>, vector<18x32xf32> -> vector<18x32xf32>
    %32 = arith.addf %24, %31 : vector<18x32xf32>
    %c2_28 = arith.constant 2 : index
    %c0_29 = arith.constant 0 : index
    %c0_30 = arith.constant 0 : index
    %33 = vector.load %arg3[%c2_28, %c0_29, %c0_30] : memref<9x18x98xbf16, #tpu.memory_space<vmem>>, vector<1x18x98xbf16>
    %34 = vector.shape_cast %33 : vector<1x18x98xbf16> to vector<18x98xbf16>
    %cst_31 = arith.constant dense<0.000000e+00> : vector<18x32xf32>
    %35 = tpu.matmul %34, %14, %cst_31 {dimension_numbers = #tpu.dot_dimension_numbers<[1], [0], [0], [1], [0, 0, 1, 1], [], []>} : vector<18x98xbf16>, vector<98x32xbf16>, vector<18x32xf32> -> vector<18x32xf32>
    %36 = arith.truncf %35 : vector<18x32xf32> to vector<18x32xbf16>
    %c2_32 = arith.constant 2 : index
    %c0_33 = arith.constant 0 : index
    %c0_34 = arith.constant 0 : index
    %37 = vector.load %arg6[%c2_32, %c0_33, %c0_34] : memref<18x32x32xbf16, #tpu.memory_space<vmem>>, vector<1x32x32xbf16>
    %38 = vector.shape_cast %37 : vector<1x32x32xbf16> to vector<32x32xbf16>
    %cst_35 = arith.constant dense<0.000000e+00> : vector<18x32xf32>
    %39 = tpu.matmul %36, %38, %cst_35 {dimension_numbers = #tpu.dot_dimension_numbers<[1], [0], [0], [1], [0, 0, 1, 1], [], []>} : vector<18x32xbf16>, vector<32x32xbf16>, vector<18x32xf32> -> vector<18x32xf32>
    %40 = arith.addf %32, %39 : vector<18x32xf32>
    %c3_36 = arith.constant 3 : index
    %c0_37 = arith.constant 0 : index
    %c0_38 = arith.constant 0 : index
    %41 = vector.load %arg3[%c3_36, %c0_37, %c0_38] : memref<9x18x98xbf16, #tpu.memory_space<vmem>>, vector<1x18x98xbf16>
    %42 = vector.shape_cast %41 : vector<1x18x98xbf16> to vector<18x98xbf16>
    %cst_39 = arith.constant dense<0.000000e+00> : vector<18x32xf32>
    %43 = tpu.matmul %42, %14, %cst_39 {dimension_numbers = #tpu.dot_dimension_numbers<[1], [0], [0], [1], [0, 0, 1, 1], [], []>} : vector<18x98xbf16>, vector<98x32xbf16>, vector<18x32xf32> -> vector<18x32xf32>
    %44 = arith.truncf %43 : vector<18x32xf32> to vector<18x32xbf16>
    %c3_40 = arith.constant 3 : index
    %c0_41 = arith.constant 0 : index
    %c0_42 = arith.constant 0 : index
    %45 = vector.load %arg6[%c3_40, %c0_41, %c0_42] : memref<18x32x32xbf16, #tpu.memory_space<vmem>>, vector<1x32x32xbf16>
    %46 = vector.shape_cast %45 : vector<1x32x32xbf16> to vector<32x32xbf16>
    %cst_43 = arith.constant dense<0.000000e+00> : vector<18x32xf32>
    %47 = tpu.matmul %44, %46, %cst_43 {dimension_numbers = #tpu.dot_dimension_numbers<[1], [0], [0], [1], [0, 0, 1, 1], [], []>} : vector<18x32xbf16>, vector<32x32xbf16>, vector<18x32xf32> -> vector<18x32xf32>
    %48 = arith.addf %40, %47 : vector<18x32xf32>
    %c4_44 = arith.constant 4 : index
    %c0_45 = arith.constant 0 : index
    %c0_46 = arith.constant 0 : index
    %49 = vector.load %arg3[%c4_44, %c0_45, %c0_46] : memref<9x18x98xbf16, #tpu.memory_space<vmem>>, vector<1x18x98xbf16>
    %50 = vector.shape_cast %49 : vector<1x18x98xbf16> to vector<18x98xbf16>
    %cst_47 = arith.constant dense<0.000000e+00> : vector<18x32xf32>
    %51 = tpu.matmul %50, %14, %cst_47 {dimension_numbers = #tpu.dot_dimension_numbers<[1], [0], [0], [1], [0, 0, 1, 1], [], []>} : vector<18x98xbf16>, vector<98x32xbf16>, vector<18x32xf32> -> vector<18x32xf32>
    %52 = arith.truncf %51 : vector<18x32xf32> to vector<18x32xbf16>
    %c4_48 = arith.constant 4 : index
    %c0_49 = arith.constant 0 : index
    %c0_50 = arith.constant 0 : index
    %53 = vector.load %arg6[%c4_48, %c0_49, %c0_50] : memref<18x32x32xbf16, #tpu.memory_space<vmem>>, vector<1x32x32xbf16>
    %54 = vector.shape_cast %53 : vector<1x32x32xbf16> to vector<32x32xbf16>
    %cst_51 = arith.constant dense<0.000000e+00> : vector<18x32xf32>
    %55 = tpu.matmul %52, %54, %cst_51 {dimension_numbers = #tpu.dot_dimension_numbers<[1], [0], [0], [1], [0, 0, 1, 1], [], []>} : vector<18x32xbf16>, vector<32x32xbf16>, vector<18x32xf32> -> vector<18x32xf32>
    %56 = arith.addf %48, %55 : vector<18x32xf32>
    %c5_52 = arith.constant 5 : index
    %c0_53 = arith.constant 0 : index
    %c0_54 = arith.constant 0 : index
    %57 = vector.load %arg3[%c5_52, %c0_53, %c0_54] : memref<9x18x98xbf16, #tpu.memory_space<vmem>>, vector<1x18x98xbf16>
    %58 = vector.shape_cast %57 : vector<1x18x98xbf16> to vector<18x98xbf16>
    %cst_55 = arith.constant dense<0.000000e+00> : vector<18x32xf32>
    %59 = tpu.matmul %58, %14, %cst_55 {dimension_numbers = #tpu.dot_dimension_numbers<[1], [0], [0], [1], [0, 0, 1, 1], [], []>} : vector<18x98xbf16>, vector<98x32xbf16>, vector<18x32xf32> -> vector<18x32xf32>
    %60 = arith.truncf %59 : vector<18x32xf32> to vector<18x32xbf16>
    %c5_56 = arith.constant 5 : index
    %c0_57 = arith.constant 0 : index
    %c0_58 = arith.constant 0 : index
    %61 = vector.load %arg6[%c5_56, %c0_57, %c0_58] : memref<18x32x32xbf16, #tpu.memory_space<vmem>>, vector<1x32x32xbf16>
    %62 = vector.shape_cast %61 : vector<1x32x32xbf16> to vector<32x32xbf16>
    %cst_59 = arith.constant dense<0.000000e+00> : vector<18x32xf32>
    %63 = tpu.matmul %60, %62, %cst_59 {dimension_numbers = #tpu.dot_dimension_numbers<[1], [0], [0], [1], [0, 0, 1, 1], [], []>} : vector<18x32xbf16>, vector<32x32xbf16>, vector<18x32xf32> -> vector<18x32xf32>
    %64 = arith.addf %56, %63 : vector<18x32xf32>
    %c6_60 = arith.constant 6 : index
    %c0_61 = arith.constant 0 : index
    %c0_62 = arith.constant 0 : index
    %65 = vector.load %arg3[%c6_60, %c0_61, %c0_62] : memref<9x18x98xbf16, #tpu.memory_space<vmem>>, vector<1x18x98xbf16>
    %66 = vector.shape_cast %65 : vector<1x18x98xbf16> to vector<18x98xbf16>
    %cst_63 = arith.constant dense<0.000000e+00> : vector<18x32xf32>
    %67 = tpu.matmul %66, %14, %cst_63 {dimension_numbers = #tpu.dot_dimension_numbers<[1], [0], [0], [1], [0, 0, 1, 1], [], []>} : vector<18x98xbf16>, vector<98x32xbf16>, vector<18x32xf32> -> vector<18x32xf32>
    %68 = arith.truncf %67 : vector<18x32xf32> to vector<18x32xbf16>
    %c6_64 = arith.constant 6 : index
    %c0_65 = arith.constant 0 : index
    %c0_66 = arith.constant 0 : index
    %69 = vector.load %arg6[%c6_64, %c0_65, %c0_66] : memref<18x32x32xbf16, #tpu.memory_space<vmem>>, vector<1x32x32xbf16>
    %70 = vector.shape_cast %69 : vector<1x32x32xbf16> to vector<32x32xbf16>
    %cst_67 = arith.constant dense<0.000000e+00> : vector<18x32xf32>
    %71 = tpu.matmul %68, %70, %cst_67 {dimension_numbers = #tpu.dot_dimension_numbers<[1], [0], [0], [1], [0, 0, 1, 1], [], []>} : vector<18x32xbf16>, vector<32x32xbf16>, vector<18x32xf32> -> vector<18x32xf32>
    %72 = arith.addf %64, %71 : vector<18x32xf32>
    %c7 = arith.constant 7 : index
    %c0_68 = arith.constant 0 : index
    %c0_69 = arith.constant 0 : index
    %73 = vector.load %arg3[%c7, %c0_68, %c0_69] : memref<9x18x98xbf16, #tpu.memory_space<vmem>>, vector<1x18x98xbf16>
    %74 = vector.shape_cast %73 : vector<1x18x98xbf16> to vector<18x98xbf16>
    %cst_70 = arith.constant dense<0.000000e+00> : vector<18x32xf32>
    %75 = tpu.matmul %74, %14, %cst_70 {dimension_numbers = #tpu.dot_dimension_numbers<[1], [0], [0], [1], [0, 0, 1, 1], [], []>} : vector<18x98xbf16>, vector<98x32xbf16>, vector<18x32xf32> -> vector<18x32xf32>
    %76 = arith.truncf %75 : vector<18x32xf32> to vector<18x32xbf16>
    %c7_71 = arith.constant 7 : index
    %c0_72 = arith.constant 0 : index
    %c0_73 = arith.constant 0 : index
    %77 = vector.load %arg6[%c7_71, %c0_72, %c0_73] : memref<18x32x32xbf16, #tpu.memory_space<vmem>>, vector<1x32x32xbf16>
    %78 = vector.shape_cast %77 : vector<1x32x32xbf16> to vector<32x32xbf16>
    %cst_74 = arith.constant dense<0.000000e+00> : vector<18x32xf32>
    %79 = tpu.matmul %76, %78, %cst_74 {dimension_numbers = #tpu.dot_dimension_numbers<[1], [0], [0], [1], [0, 0, 1, 1], [], []>} : vector<18x32xbf16>, vector<32x32xbf16>, vector<18x32xf32> -> vector<18x32xf32>
    %80 = arith.addf %72, %79 : vector<18x32xf32>
    %c8 = arith.constant 8 : index
    %c0_75 = arith.constant 0 : index
    %c0_76 = arith.constant 0 : index
    %81 = vector.load %arg3[%c8, %c0_75, %c0_76] : memref<9x18x98xbf16, #tpu.memory_space<vmem>>, vector<1x18x98xbf16>
    %82 = vector.shape_cast %81 : vector<1x18x98xbf16> to vector<18x98xbf16>
    %cst_77 = arith.constant dense<0.000000e+00> : vector<18x32xf32>
    %83 = tpu.matmul %82, %14, %cst_77 {dimension_numbers = #tpu.dot_dimension_numbers<[1], [0], [0], [1], [0, 0, 1, 1], [], []>} : vector<18x98xbf16>, vector<98x32xbf16>, vector<18x32xf32> -> vector<18x32xf32>
    %84 = arith.truncf %83 : vector<18x32xf32> to vector<18x32xbf16>
    %c8_78 = arith.constant 8 : index
    %c0_79 = arith.constant 0 : index
    %c0_80 = arith.constant 0 : index
    %85 = vector.load %arg6[%c8_78, %c0_79, %c0_80] : memref<18x32x32xbf16, #tpu.memory_space<vmem>>, vector<1x32x32xbf16>
    %86 = vector.shape_cast %85 : vector<1x32x32xbf16> to vector<32x32xbf16>
    %cst_81 = arith.constant dense<0.000000e+00> : vector<18x32xf32>
    %87 = tpu.matmul %84, %86, %cst_81 {dimension_numbers = #tpu.dot_dimension_numbers<[1], [0], [0], [1], [0, 0, 1, 1], [], []>} : vector<18x32xbf16>, vector<32x32xbf16>, vector<18x32xf32> -> vector<18x32xf32>
    %88 = arith.addf %80, %87 : vector<18x32xf32>
    %cst_82 = arith.constant 0.000000e+00 : f32
    %89 = vector.broadcast %cst_82 : f32 to vector<18x32xf32>
    %90 = arith.maximumf %88, %89 : vector<18x32xf32>
    %91 = arith.truncf %90 : vector<18x32xf32> to vector<18x32xbf16>
    %92 = vector.shape_cast %2 : vector<1x32xf32> to vector<1x32xf32>
    %93 = vector.broadcast %92 : vector<1x32xf32> to vector<2x32xf32>
    %c0_83 = arith.constant 0 : index
    %c0_84 = arith.constant 0 : index
    %c0_85 = arith.constant 0 : index
    %94 = vector.load %arg4[%c0_83, %c0_84, %c0_85] : memref<9x2x18xbf16, #tpu.memory_space<vmem>>, vector<1x2x18xbf16>
    %95 = vector.shape_cast %94 : vector<1x2x18xbf16> to vector<2x18xbf16>
    %cst_86 = arith.constant dense<0.000000e+00> : vector<2x32xf32>
    %96 = tpu.matmul %95, %91, %cst_86 {dimension_numbers = #tpu.dot_dimension_numbers<[1], [0], [0], [1], [0, 0, 1, 1], [], []>} : vector<2x18xbf16>, vector<18x32xbf16>, vector<2x32xf32> -> vector<2x32xf32>
    %97 = arith.truncf %96 : vector<2x32xf32> to vector<2x32xbf16>
    %c9 = arith.constant 9 : index
    %c0_87 = arith.constant 0 : index
    %c0_88 = arith.constant 0 : index
    %98 = vector.load %arg6[%c9, %c0_87, %c0_88] : memref<18x32x32xbf16, #tpu.memory_space<vmem>>, vector<1x32x32xbf16>
    %99 = vector.shape_cast %98 : vector<1x32x32xbf16> to vector<32x32xbf16>
    %cst_89 = arith.constant dense<0.000000e+00> : vector<2x32xf32>
    %100 = tpu.matmul %97, %99, %cst_89 {dimension_numbers = #tpu.dot_dimension_numbers<[1], [0], [0], [1], [0, 0, 1, 1], [], []>} : vector<2x32xbf16>, vector<32x32xbf16>, vector<2x32xf32> -> vector<2x32xf32>
    %101 = arith.addf %93, %100 : vector<2x32xf32>
    %c1_90 = arith.constant 1 : index
    %c0_91 = arith.constant 0 : index
    %c0_92 = arith.constant 0 : index
    %102 = vector.load %arg4[%c1_90, %c0_91, %c0_92] : memref<9x2x18xbf16, #tpu.memory_space<vmem>>, vector<1x2x18xbf16>
    %103 = vector.shape_cast %102 : vector<1x2x18xbf16> to vector<2x18xbf16>
    %cst_93 = arith.constant dense<0.000000e+00> : vector<2x32xf32>
    %104 = tpu.matmul %103, %91, %cst_93 {dimension_numbers = #tpu.dot_dimension_numbers<[1], [0], [0], [1], [0, 0, 1, 1], [], []>} : vector<2x18xbf16>, vector<18x32xbf16>, vector<2x32xf32> -> vector<2x32xf32>
    %105 = arith.truncf %104 : vector<2x32xf32> to vector<2x32xbf16>
    %c10 = arith.constant 10 : index
    %c0_94 = arith.constant 0 : index
    %c0_95 = arith.constant 0 : index
    %106 = vector.load %arg6[%c10, %c0_94, %c0_95] : memref<18x32x32xbf16, #tpu.memory_space<vmem>>, vector<1x32x32xbf16>
    %107 = vector.shape_cast %106 : vector<1x32x32xbf16> to vector<32x32xbf16>
    %cst_96 = arith.constant dense<0.000000e+00> : vector<2x32xf32>
    %108 = tpu.matmul %105, %107, %cst_96 {dimension_numbers = #tpu.dot_dimension_numbers<[1], [0], [0], [1], [0, 0, 1, 1], [], []>} : vector<2x32xbf16>, vector<32x32xbf16>, vector<2x32xf32> -> vector<2x32xf32>
    %109 = arith.addf %101, %108 : vector<2x32xf32>
    %c2_97 = arith.constant 2 : index
    %c0_98 = arith.constant 0 : index
    %c0_99 = arith.constant 0 : index
    %110 = vector.load %arg4[%c2_97, %c0_98, %c0_99] : memref<9x2x18xbf16, #tpu.memory_space<vmem>>, vector<1x2x18xbf16>
    %111 = vector.shape_cast %110 : vector<1x2x18xbf16> to vector<2x18xbf16>
    %cst_100 = arith.constant dense<0.000000e+00> : vector<2x32xf32>
    %112 = tpu.matmul %111, %91, %cst_100 {dimension_numbers = #tpu.dot_dimension_numbers<[1], [0], [0], [1], [0, 0, 1, 1], [], []>} : vector<2x18xbf16>, vector<18x32xbf16>, vector<2x32xf32> -> vector<2x32xf32>
    %113 = arith.truncf %112 : vector<2x32xf32> to vector<2x32xbf16>
    %c11 = arith.constant 11 : index
    %c0_101 = arith.constant 0 : index
    %c0_102 = arith.constant 0 : index
    %114 = vector.load %arg6[%c11, %c0_101, %c0_102] : memref<18x32x32xbf16, #tpu.memory_space<vmem>>, vector<1x32x32xbf16>
    %115 = vector.shape_cast %114 : vector<1x32x32xbf16> to vector<32x32xbf16>
    %cst_103 = arith.constant dense<0.000000e+00> : vector<2x32xf32>
    %116 = tpu.matmul %113, %115, %cst_103 {dimension_numbers = #tpu.dot_dimension_numbers<[1], [0], [0], [1], [0, 0, 1, 1], [], []>} : vector<2x32xbf16>, vector<32x32xbf16>, vector<2x32xf32> -> vector<2x32xf32>
    %117 = arith.addf %109, %116 : vector<2x32xf32>
    %c3_104 = arith.constant 3 : index
    %c0_105 = arith.constant 0 : index
    %c0_106 = arith.constant 0 : index
    %118 = vector.load %arg4[%c3_104, %c0_105, %c0_106] : memref<9x2x18xbf16, #tpu.memory_space<vmem>>, vector<1x2x18xbf16>
    %119 = vector.shape_cast %118 : vector<1x2x18xbf16> to vector<2x18xbf16>
    %cst_107 = arith.constant dense<0.000000e+00> : vector<2x32xf32>
    %120 = tpu.matmul %119, %91, %cst_107 {dimension_numbers = #tpu.dot_dimension_numbers<[1], [0], [0], [1], [0, 0, 1, 1], [], []>} : vector<2x18xbf16>, vector<18x32xbf16>, vector<2x32xf32> -> vector<2x32xf32>
    %121 = arith.truncf %120 : vector<2x32xf32> to vector<2x32xbf16>
    %c12 = arith.constant 12 : index
    %c0_108 = arith.constant 0 : index
    %c0_109 = arith.constant 0 : index
    %122 = vector.load %arg6[%c12, %c0_108, %c0_109] : memref<18x32x32xbf16, #tpu.memory_space<vmem>>, vector<1x32x32xbf16>
    %123 = vector.shape_cast %122 : vector<1x32x32xbf16> to vector<32x32xbf16>
    %cst_110 = arith.constant dense<0.000000e+00> : vector<2x32xf32>
    %124 = tpu.matmul %121, %123, %cst_110 {dimension_numbers = #tpu.dot_dimension_numbers<[1], [0], [0], [1], [0, 0, 1, 1], [], []>} : vector<2x32xbf16>, vector<32x32xbf16>, vector<2x32xf32> -> vector<2x32xf32>
    %125 = arith.addf %117, %124 : vector<2x32xf32>
    %c4_111 = arith.constant 4 : index
    %c0_112 = arith.constant 0 : index
    %c0_113 = arith.constant 0 : index
    %126 = vector.load %arg4[%c4_111, %c0_112, %c0_113] : memref<9x2x18xbf16, #tpu.memory_space<vmem>>, vector<1x2x18xbf16>
    %127 = vector.shape_cast %126 : vector<1x2x18xbf16> to vector<2x18xbf16>
    %cst_114 = arith.constant dense<0.000000e+00> : vector<2x32xf32>
    %128 = tpu.matmul %127, %91, %cst_114 {dimension_numbers = #tpu.dot_dimension_numbers<[1], [0], [0], [1], [0, 0, 1, 1], [], []>} : vector<2x18xbf16>, vector<18x32xbf16>, vector<2x32xf32> -> vector<2x32xf32>
    %129 = arith.truncf %128 : vector<2x32xf32> to vector<2x32xbf16>
    %c13 = arith.constant 13 : index
    %c0_115 = arith.constant 0 : index
    %c0_116 = arith.constant 0 : index
    %130 = vector.load %arg6[%c13, %c0_115, %c0_116] : memref<18x32x32xbf16, #tpu.memory_space<vmem>>, vector<1x32x32xbf16>
    %131 = vector.shape_cast %130 : vector<1x32x32xbf16> to vector<32x32xbf16>
    %cst_117 = arith.constant dense<0.000000e+00> : vector<2x32xf32>
    %132 = tpu.matmul %129, %131, %cst_117 {dimension_numbers = #tpu.dot_dimension_numbers<[1], [0], [0], [1], [0, 0, 1, 1], [], []>} : vector<2x32xbf16>, vector<32x32xbf16>, vector<2x32xf32> -> vector<2x32xf32>
    %133 = arith.addf %125, %132 : vector<2x32xf32>
    %c5_118 = arith.constant 5 : index
    %c0_119 = arith.constant 0 : index
    %c0_120 = arith.constant 0 : index
    %134 = vector.load %arg4[%c5_118, %c0_119, %c0_120] : memref<9x2x18xbf16, #tpu.memory_space<vmem>>, vector<1x2x18xbf16>
    %135 = vector.shape_cast %134 : vector<1x2x18xbf16> to vector<2x18xbf16>
    %cst_121 = arith.constant dense<0.000000e+00> : vector<2x32xf32>
    %136 = tpu.matmul %135, %91, %cst_121 {dimension_numbers = #tpu.dot_dimension_numbers<[1], [0], [0], [1], [0, 0, 1, 1], [], []>} : vector<2x18xbf16>, vector<18x32xbf16>, vector<2x32xf32> -> vector<2x32xf32>
    %137 = arith.truncf %136 : vector<2x32xf32> to vector<2x32xbf16>
    %c14 = arith.constant 14 : index
    %c0_122 = arith.constant 0 : index
    %c0_123 = arith.constant 0 : index
    %138 = vector.load %arg6[%c14, %c0_122, %c0_123] : memref<18x32x32xbf16, #tpu.memory_space<vmem>>, vector<1x32x32xbf16>
    %139 = vector.shape_cast %138 : vector<1x32x32xbf16> to vector<32x32xbf16>
    %cst_124 = arith.constant dense<0.000000e+00> : vector<2x32xf32>
    %140 = tpu.matmul %137, %139, %cst_124 {dimension_numbers = #tpu.dot_dimension_numbers<[1], [0], [0], [1], [0, 0, 1, 1], [], []>} : vector<2x32xbf16>, vector<32x32xbf16>, vector<2x32xf32> -> vector<2x32xf32>
    %141 = arith.addf %133, %140 : vector<2x32xf32>
    %c6_125 = arith.constant 6 : index
    %c0_126 = arith.constant 0 : index
    %c0_127 = arith.constant 0 : index
    %142 = vector.load %arg4[%c6_125, %c0_126, %c0_127] : memref<9x2x18xbf16, #tpu.memory_space<vmem>>, vector<1x2x18xbf16>
    %143 = vector.shape_cast %142 : vector<1x2x18xbf16> to vector<2x18xbf16>
    %cst_128 = arith.constant dense<0.000000e+00> : vector<2x32xf32>
    %144 = tpu.matmul %143, %91, %cst_128 {dimension_numbers = #tpu.dot_dimension_numbers<[1], [0], [0], [1], [0, 0, 1, 1], [], []>} : vector<2x18xbf16>, vector<18x32xbf16>, vector<2x32xf32> -> vector<2x32xf32>
    %145 = arith.truncf %144 : vector<2x32xf32> to vector<2x32xbf16>
    %c15 = arith.constant 15 : index
    %c0_129 = arith.constant 0 : index
    %c0_130 = arith.constant 0 : index
    %146 = vector.load %arg6[%c15, %c0_129, %c0_130] : memref<18x32x32xbf16, #tpu.memory_space<vmem>>, vector<1x32x32xbf16>
    %147 = vector.shape_cast %146 : vector<1x32x32xbf16> to vector<32x32xbf16>
    %cst_131 = arith.constant dense<0.000000e+00> : vector<2x32xf32>
    %148 = tpu.matmul %145, %147, %cst_131 {dimension_numbers = #tpu.dot_dimension_numbers<[1], [0], [0], [1], [0, 0, 1, 1], [], []>} : vector<2x32xbf16>, vector<32x32xbf16>, vector<2x32xf32> -> vector<2x32xf32>
    %149 = arith.addf %141, %148 : vector<2x32xf32>
    %c7_132 = arith.constant 7 : index
    %c0_133 = arith.constant 0 : index
    %c0_134 = arith.constant 0 : index
    %150 = vector.load %arg4[%c7_132, %c0_133, %c0_134] : memref<9x2x18xbf16, #tpu.memory_space<vmem>>, vector<1x2x18xbf16>
    %151 = vector.shape_cast %150 : vector<1x2x18xbf16> to vector<2x18xbf16>
    %cst_135 = arith.constant dense<0.000000e+00> : vector<2x32xf32>
    %152 = tpu.matmul %151, %91, %cst_135 {dimension_numbers = #tpu.dot_dimension_numbers<[1], [0], [0], [1], [0, 0, 1, 1], [], []>} : vector<2x18xbf16>, vector<18x32xbf16>, vector<2x32xf32> -> vector<2x32xf32>
    %153 = arith.truncf %152 : vector<2x32xf32> to vector<2x32xbf16>
    %c16 = arith.constant 16 : index
    %c0_136 = arith.constant 0 : index
    %c0_137 = arith.constant 0 : index
    %154 = vector.load %arg6[%c16, %c0_136, %c0_137] : memref<18x32x32xbf16, #tpu.memory_space<vmem>>, vector<1x32x32xbf16>
    %155 = vector.shape_cast %154 : vector<1x32x32xbf16> to vector<32x32xbf16>
    %cst_138 = arith.constant dense<0.000000e+00> : vector<2x32xf32>
    %156 = tpu.matmul %153, %155, %cst_138 {dimension_numbers = #tpu.dot_dimension_numbers<[1], [0], [0], [1], [0, 0, 1, 1], [], []>} : vector<2x32xbf16>, vector<32x32xbf16>, vector<2x32xf32> -> vector<2x32xf32>
    %157 = arith.addf %149, %156 : vector<2x32xf32>
    %c8_139 = arith.constant 8 : index
    %c0_140 = arith.constant 0 : index
    %c0_141 = arith.constant 0 : index
    %158 = vector.load %arg4[%c8_139, %c0_140, %c0_141] : memref<9x2x18xbf16, #tpu.memory_space<vmem>>, vector<1x2x18xbf16>
    %159 = vector.shape_cast %158 : vector<1x2x18xbf16> to vector<2x18xbf16>
    %cst_142 = arith.constant dense<0.000000e+00> : vector<2x32xf32>
    %160 = tpu.matmul %159, %91, %cst_142 {dimension_numbers = #tpu.dot_dimension_numbers<[1], [0], [0], [1], [0, 0, 1, 1], [], []>} : vector<2x18xbf16>, vector<18x32xbf16>, vector<2x32xf32> -> vector<2x32xf32>
    %161 = arith.truncf %160 : vector<2x32xf32> to vector<2x32xbf16>
    %c17 = arith.constant 17 : index
    %c0_143 = arith.constant 0 : index
    %c0_144 = arith.constant 0 : index
    %162 = vector.load %arg6[%c17, %c0_143, %c0_144] : memref<18x32x32xbf16, #tpu.memory_space<vmem>>, vector<1x32x32xbf16>
    %163 = vector.shape_cast %162 : vector<1x32x32xbf16> to vector<32x32xbf16>
    %cst_145 = arith.constant dense<0.000000e+00> : vector<2x32xf32>
    %164 = tpu.matmul %161, %163, %cst_145 {dimension_numbers = #tpu.dot_dimension_numbers<[1], [0], [0], [1], [0, 0, 1, 1], [], []>} : vector<2x32xbf16>, vector<32x32xbf16>, vector<2x32xf32> -> vector<2x32xf32>
    %165 = arith.addf %157, %164 : vector<2x32xf32>
    %cst_146 = arith.constant 0.000000e+00 : f32
    %166 = vector.broadcast %cst_146 : f32 to vector<2x32xf32>
    %167 = arith.maximumf %165, %166 : vector<2x32xf32>
    %c0_147 = arith.constant 0 : index
    %c0_148 = arith.constant 0 : index
    %168 = vector.load %arg7[%c0_147, %c0_148] : memref<32x128xf32, #tpu.memory_space<vmem>>, vector<32x128xf32>
    %cst_149 = arith.constant dense<0.000000e+00> : vector<2x128xf32>
    %169 = tpu.matmul %167, %168, %cst_149 {dimension_numbers = #tpu.dot_dimension_numbers<[1], [0], [0], [1], [0, 0, 1, 1], [], []>} : vector<2x32xf32>, vector<32x128xf32>, vector<2x128xf32> -> vector<2x128xf32>
    %c0_150 = arith.constant 0 : index
    %c0_151 = arith.constant 0 : index
    %170 = vector.load %arg1[%c0_150, %c0_151] : memref<2x9xf32, #tpu.memory_space<vmem>>, vector<2x9xf32>
    %c0_152 = arith.constant 0 : index
    %c0_153 = arith.constant 0 : index
    %171 = vector.load %arg8[%c0_152, %c0_153] : memref<9x128xf32, #tpu.memory_space<vmem>>, vector<9x128xf32>
    %cst_154 = arith.constant dense<0.000000e+00> : vector<2x128xf32>
    %172 = tpu.matmul %170, %171, %cst_154 {dimension_numbers = #tpu.dot_dimension_numbers<[1], [0], [0], [1], [0, 0, 1, 1], [], []>} : vector<2x9xf32>, vector<9x128xf32>, vector<2x128xf32> -> vector<2x128xf32>
    %173 = arith.addf %169, %172 : vector<2x128xf32>
    %174 = vector.broadcast %3 : vector<1x128xf32> to vector<2x128xf32>
    %175 = arith.addf %173, %174 : vector<2x128xf32>
    %176 = vector.broadcast %6 : vector<1x128xf32> to vector<2x128xf32>
    %177 = arith.maximumf %175, %176 : vector<2x128xf32>
    %c0_155 = arith.constant 0 : index
    %c0_156 = arith.constant 0 : index
    %178 = vector.load %arg9[%c0_155, %c0_156] : memref<128x128xf32, #tpu.memory_space<vmem>>, vector<128x128xf32>
    %cst_157 = arith.constant dense<0.000000e+00> : vector<2x128xf32>
    %179 = tpu.matmul %177, %178, %cst_157 {dimension_numbers = #tpu.dot_dimension_numbers<[1], [0], [0], [1], [0, 0, 1, 1], [], []>} : vector<2x128xf32>, vector<128x128xf32>, vector<2x128xf32> -> vector<2x128xf32>
    %180 = arith.subf %177, %179 : vector<2x128xf32>
    %181 = arith.mulf %180, %180 : vector<2x128xf32>
    %c0_158 = arith.constant 0 : index
    %c0_159 = arith.constant 0 : index
    %182 = vector.load %arg9[%c0_158, %c0_159] : memref<128x128xf32, #tpu.memory_space<vmem>>, vector<128x128xf32>
    %cst_160 = arith.constant dense<0.000000e+00> : vector<2x128xf32>
    %183 = tpu.matmul %181, %182, %cst_160 {dimension_numbers = #tpu.dot_dimension_numbers<[1], [0], [0], [1], [0, 0, 1, 1], [], []>} : vector<2x128xf32>, vector<128x128xf32>, vector<2x128xf32> -> vector<2x128xf32>
    %cst_161 = arith.constant 9.99999974E-6 : f32
    %184 = vector.broadcast %cst_161 : f32 to vector<2x128xf32>
    %185 = arith.addf %183, %184 : vector<2x128xf32>
    %186 = math.rsqrt %185 : vector<2x128xf32>
    %187 = arith.mulf %180, %186 : vector<2x128xf32>
    %188 = vector.broadcast %4 : vector<1x128xf32> to vector<2x128xf32>
    %189 = arith.mulf %187, %188 : vector<2x128xf32>
    %190 = vector.broadcast %5 : vector<1x128xf32> to vector<2x128xf32>
    %191 = arith.addf %189, %190 : vector<2x128xf32>
    %c0_162 = arith.constant 0 : index
    %c0_163 = arith.constant 0 : index
    %192 = vector.load %arg11[%c0_162, %c0_163] : memref<2x256xf32, #tpu.memory_space<vmem>>, vector<2x128xf32>
    tpu.vector_store %arg11[%c0_162, %c0_163], %191 {strides = array<i32>} : memref<2x256xf32, #tpu.memory_space<vmem>>, vector<2x128xf32>,
    %c0_164 = arith.constant 0 : index
    %c0_165 = arith.constant 0 : index
    %193 = vector.load %arg2[%c0_164, %c0_165] : memref<2x128xf32, #tpu.memory_space<vmem>>, vector<2x128xf32>
    %c0_166 = arith.constant 0 : index
    %c128 = arith.constant 128 : index
    %194 = vector.load %arg11[%c0_166, %c128] : memref<2x256xf32, #tpu.memory_space<vmem>>, vector<2x128xf32>
    tpu.vector_store %arg11[%c0_166, %c128], %193 {strides = array<i32>} : memref<2x256xf32, #tpu.memory_space<vmem>>, vector<2x128xf32>,
    return
  }
}

</mosaic_0001>

<bundles_post_ra>
// kernel: forward.1
= control target key start
LH: loop header
LB: loop body
LE: loop exit
PB: predicated region body
PF: predicated region fallthrough
CT: control target
= control target key end

     0   :  { %vm133_vm0 = vcmask 1044480   ;;  %vm134_vm1 = vcmask 1045504   ;;  %v3885_v0 = vmov 0.0   ;;  %v3886_v2 = vmov 65535   ;;  %s4677_s5 = inlined_call_operand.vmem [shape: bf16[27,32], index: 5, kind: input, shape index: {}]   ;;  %s4678_s0 = inlined_call_operand.vmem [shape: bf16[98,27], index: 0, kind: input, shape index: {}]   ;;  %s4679_s3 = inlined_call_operand.vmem [shape: bf16[9,18,98], index: 3, kind: input, shape index: {}]   ;;  %s4680_s6 = inlined_call_operand.vmem [shape: bf16[18,32,32], index: 6, kind: input, shape index: {}]   ;;  %s4681_s10 = inlined_call_operand.vmem [shape: f32[8,128], index: 10, kind: input, shape index: {}]   ;;  %s4682_s4 = inlined_call_operand.vmem [shape: bf16[9,2,18], index: 4, kind: input, shape index: {}]   ;;  %s4683_s7 = inlined_call_operand.vmem [shape: f32[32,128], index: 7, kind: input, shape index: {}]   ;;  %s4684_s8 = inlined_call_operand.vmem [shape: f32[9,128], index: 8, kind: input, shape index: {}]   ;;  %s4685_s1 = inlined_call_operand.vmem [shape: f32[2,9], index: 1, kind: input, shape index: {}]   ;;  %s4686_s9 = inlined_call_operand.vmem [shape: f32[128,128], index: 9, kind: input, shape index: {}]   ;;  %s4687_s2 = inlined_call_operand.vmem [shape: f32[2,128], index: 2, kind: input, shape index: {}]   ;;  %s4688_s11 = inlined_call_operand.vmem [shape: f32[2,256], index: 11, kind: output, shape index: {}]  }
   0x1   :  { %3310 = vmatprep.subr.bf16.mxu0 %v3885_v0  ;;  %v3820_v1 = vld [vmem:[%s4677_s5 + $0x8] sm:$0x3f]   ;;  %v135_v3 = vsel %vm133_vm0, 4294967295, %v3886_v2  ;;  %vm3887_vm2 = vmmov 0   ;;  %v3821_v6 = vld [vmem:[%s4677_s5] sm:$0xff]   ;;  %vm111_vm3 = vcmask 220160  }
   0x2   :  { %v136_v4 = vsel %vm134_vm1, %v135_v3, 0  ;;  %3314 = vmatprep.mubr.msk.bf16.mxu0 %vm3887_vm2, %v3885_v0  ;;  %v3822_v7 = vld [vmem:[%s4678_s0] sm:$0xff]   ;;  %v3823_v8 = vld [vmem:[%s4678_s0 + $0x8] sm:$0xff]   ;;  %v3824_v9 = vld [vmem:[%s4678_s0 + $0x10] sm:$0xff]   ;;  %vm263_vm4 = vcmask 801792   ;;  %vm270_vm5 = vcmask 1040384  }
   0x3   :  { %v138_v5 = vand.u32 %v3820_v1, %v136_v4  ;;  %v3825_v10 = vld [vmem:[%s4678_s0 + $0x18] sm:$0xff]   ;;  %v3826_v11 = vld [vmem:[%s4678_s0 + $0x20] sm:$0xff]   ;;  %v3827_v12 = vld [vmem:[%s4678_s0 + $0x28] sm:$0xff]   ;;  %vm340_vm6 = vcmask 261120   ;;  %vm1544_vm7 = vcmask 146432   ;;  %vm2517_vm8 = vcmask 72704  }
   0x4   :  { %v3828_v13 = vld [vmem:[%s4678_s0 + $0x30] ss:$0 sps:$4 sm:$0x11]   ;;  %v3829_v14 = vld [vmem:[%s4679_s3] sm:$0xff]  }
   0x5   :  { %3311 = vmatpush3.bf16.msra.mxu0 %v138_v5  ;;  %v3831_v15 = vld [vmem:[%s4679_s3 + $0xc] sm:$0xff]   ;;  %3356 = vmatprep.mubr.msk.bf16.mxu1 %vm263_vm4, %v3829_v14  ;;  %v4009_v16 = vld [vmem:[%s4681_s10] ss:$0 sm:$0xff] }
   0x6   :  { %3312 = vmatprep.subr.bf16.mxu0 %v3885_v0 }
   0x9   :  { %3313 = vmatpush3.bf16.msra.mxu0 %v3821_v6 }
   0xc   :  { %3315 = vmatmul.mubr.msk.bf16.vlgmr.msra.gmra.mxu0 %vm111_vm3, %v3822_v7 }
   0xd   :  { %3318 = vmatprep.mubr.msk.bf16.mxu0 %vm3887_vm2, %v3885_v0 }
  0x14   :  { %3319 = vmatmul.mubr.msk.bf16.gmra.mxu0 %vm111_vm3, %v3823_v8 }
  0x15   :  { %3322 = vmatprep.mubr.msk.bf16.mxu0 %vm3887_vm2, %v3885_v0 }
  0x1c   :  { %3323 = vmatmul.mubr.msk.bf16.gmra.mxu0 %vm111_vm3, %v3824_v9 }
  0x1d   :  { %3326 = vmatprep.mubr.msk.bf16.mxu0 %vm3887_vm2, %v3885_v0 }
  0x24   :  { %3327 = vmatmul.mubr.msk.bf16.gmra.mxu0 %vm111_vm3, %v3825_v10 }
  0x25   :  { %3330 = vmatprep.mubr.msk.bf16.mxu0 %vm3887_vm2, %v3885_v0 }
  0x2c   :  { %3331 = vmatmul.mubr.msk.bf16.gmra.mxu0 %vm111_vm3, %v3826_v11 }
  0x2d   :  { %3334 = vmatprep.mubr.msk.bf16.mxu0 %vm3887_vm2, %v3885_v0 }
  0x34   :  { %3335 = vmatmul.mubr.msk.bf16.gmra.mxu0 %vm111_vm3, %v3827_v12 }
  0x35   :  { %3338 = vmatprep.mubr.msk.bf16.mxu0 %vm3887_vm2, %v3885_v0 }
  0x3c   :  { %3339 = vmatmul.mubr.msk.bf16.gmra.mxu0 %vm111_vm3, %v3828_v13 }
  0x3d   :  { %3382 = vmatprep.mubr.msk.bf16.mxu0 %vm263_vm4, %v3831_v15 }
  0xcc   :  { %v174_v17 = vpop.f32.mrf.mxu0 }
  0xcd   :  { %v175_v19 = vadd.f32 %v4009_v16, %v174_v17  ;;  %v3830_v17 = vld [vmem:[%s4679_s3 + $0x8] ss:$0 sps:$4 sm:$0x11]  }
  0xce   :  { %v3316_v18 = vpop.f32.mrf.mxu0 }
  0xcf   :  { %v228_v23 = vmax.f32 %v175_v19, 0.0  ;;  %v3833_v18 = vld [vmem:[%s4679_s3 + $0x14] ss:$0 sps:$4 sm:$0x11]   ;;  %v3834_v19 = vld [vmem:[%s4680_s6 + $0x20] sm:$0xff]  }
  0xd0   :  { %v177_v20 = vpop.f32.mrf.mxu0 }
  0xd1   :  { %v178_v21 = vadd.f32 %v4009_v16, %v177_v20  ;;  %v3835_v20 = vld [vmem:[%s4680_s6 + $0x8] sm:$0xff]  }
  0xd2   :  { %v3317_v22 = vpop.f32.mrf.mxu0 }
  0xd3   :  { %v229_v24 = vmax.f32 %v178_v21, 0.0  ;;  %v3836_v21 = vld [vmem:[%s4680_s6] sm:$0xff]   ;;  %v3837_v22 = vld [vmem:[%s4680_s6 + $0x18] sm:$0xff]  }
  0xd4   :  { %v182_v25 = vpop.f32.mrf.mxu0 }
  0xd5   :  { %v4013_v26 = vpack.c.bf16 %v229_v24, %v228_v23  ;;  %v183_v10 = vadd.f32 %v4009_v16, %v182_v25 }
  0xd6   :  { %v3320_v27 = vpop.f32.mrf.mxu0 }
  0xd7   :  { %v230_v14 = vmax.f32 %v183_v10, 0.0 }
  0xd8   :  { %v185_v28 = vpop.f32.mrf.mxu0 }
  0xd9   :  { %v186_v7 = vadd.f32 %v4009_v16, %v185_v28 }
  0xda   :  { %v3321_v29 = vpop.f32.mrf.mxu0 }
  0xdb   :  { %v231_v12 = vmax.f32 %v186_v7, 0.0 }
  0xdc   :  { %v190_v30 = vpop.f32.mrf.mxu0 }
  0xdd   :  { %v191_v5 = vadd.f32 %v4009_v16, %v190_v30  ;;  %v4060_v15 = vpack.c.bf16 %v231_v12, %v230_v14 }
  0xde   :  { %v3324_v31 = vpop.f32.mrf.mxu0 }
  0xdf   :  { %v232_v11 = vmax.f32 %v191_v5, 0.0  ;;  %v3844_v5 = vld [vmem:[%s4679_s3 + $0x2c] ss:$0 sps:$4 sm:$0x11]  }
  0xe0   :  { %v193_v32 = vpop.f32.mrf.mxu0 }
  0xe1   :  { %v194_v2 = vadd.f32 %v4009_v16, %v193_v32 }
  0xe2   :  { %v3325_v33 = vpop.f32.mrf.mxu0 }
  0xe3   :  { %v233_v8 = vmax.f32 %v194_v2, 0.0 }
  0xe4   :  { %v198_v34 = vpop.f32.mrf.mxu0 }
  0xe5   :  { %v199_v63 = vadd.f32 %v4009_v16, %v198_v34  ;;  %v4054_v13 = vpack.c.bf16 %v233_v8, %v232_v11 }
  0xe6   :  { %v3328_v35 = vpop.f32.mrf.mxu0 }
  0xe7   :  { %v234_v6 = vmax.f32 %v199_v63, 0.0  ;;  %v3838_v35 = vld [vmem:[%s4680_s6 + $0x10] sm:$0xff]  }
  0xe8   :  { %v201_v36 = vpop.f32.mrf.mxu0 }
  0xe9   :  { %v202_v59 = vadd.f32 %v4009_v16, %v201_v36  ;;  %v3839_v36 = vld [vmem:[%s4679_s3 + $0x18] sm:$0xff]  }
  0xea   :  { %v3329_v37 = vpop.f32.mrf.mxu0 }
  0xeb   :  { %v235_v3 = vmax.f32 %v202_v59, 0.0 }
  0xec   :  { %v206_v38 = vpop.f32.mrf.mxu0 }
  0xed   :  { %v207_v55 = vadd.f32 %v4009_v16, %v206_v38  ;;  %v4047_v9 = vpack.c.bf16 %v235_v3, %v234_v6  ;;  %v3841_v38 = vld [vmem:[%s4680_s6 + $0x38] sm:$0xff]   ;;  %v3845_v3 = vld [vmem:[%s4680_s6 + $0x48] sm:$0xff]   ;;  %v3846_v6 = vld [vmem:[%s4680_s6 + $0x40] sm:$0xff]  }
  0xee   :  { %v3332_v39 = vpop.f32.mrf.mxu0 }
  0xef   :  { %v236_v1 = vmax.f32 %v207_v55, 0.0  ;;  %v3840_v39 = vld [vmem:[%s4679_s3 + $0x20] ss:$0 sps:$4 sm:$0x11]  }
  0xf0   :  { %v209_v40 = vpop.f32.mrf.mxu0 }
  0xf1   :  { %v210_v51 = vadd.f32 %v4009_v16, %v209_v40  ;;  %v3842_v40 = vld [vmem:[%s4680_s6 + $0x30] sm:$0xff]  }
  0xf2   :  { %v3333_v41 = vpop.f32.mrf.mxu0 }
  0xf3   :  { %v237_v60 = vmax.f32 %v210_v51, 0.0 }
  0xf4   :  { %v214_v42 = vpop.f32.mrf.mxu0 }
  0xf5   :  { %v215_v48 = vadd.f32 %v4009_v16, %v214_v42  ;;  %v4039_v4 = vpack.c.bf16 %v237_v60, %v236_v1  ;;  %v3843_v1 = vld [vmem:[%s4679_s3 + $0x24] sm:$0xff]  }
  0xf6   :  { %v3336_v43 = vpop.f32.mrf.mxu0 }
  0xf7   :  { %v238_v56 = vmax.f32 %v215_v48, 0.0  ;;  %v2871_v43 = vld [vmem:[%s4681_s10 + $0x1] ss:$0 sm:$0xff] }
  0xf8   :  { %v217_v44 = vpop.f32.mrf.mxu0 }
  0xf9   :  { %v218_v46 = vadd.f32 %v4009_v16, %v217_v44 }
  0xfa   :  { %v3337_v45 = vpop.f32.mrf.mxu0 }
  0xfb   :  { %v239_v52 = vmax.f32 %v218_v46, 0.0 }
  0xfc   :  { %v222_v47 = vpop.f32.mrf.mxu0 }
  0xfd   :  { %v223_v49 = vadd.f32 %v4009_v16, %v222_v47  ;;  %v4023_v61 = vpack.c.bf16 %v239_v52, %v238_v56  ;;  %v3832_v16 = vld [vmem:[%s4680_s6 + $0x28] sm:$0xff]  }
  0xfe   :  { %v3340_v50 = vpop.f32.mrf.mxu0 }
  0xff   :  { %v240_v53 = vmax.f32 %v223_v49, 0.0 }
 0x100   :  { %v225_v54 = vpop.f32.mrf.mxu0 }
 0x101   :  { %v4020_v57 = vpack.c.bf16 %v240_v53, %v240_v53 }
 0x102   :  { %v3341_v58 = vpop.f32.mrf.mxu0 }
 0x103   :  { %3808 = vmatprep.subr.msk.bf16.mxu1 %vm270_vm5, %v4020_v57  ;;  %3809 = vmatprep.subr.msk.bf16.mxu0 %vm270_vm5, %v4020_v57  ;;  %v4031_v62 = vsel %vm270_vm5, %v4020_v57, 0 }
 0x104   :  { %3343 = vmatpush3.bf16.msra.mxu1 %v4031_v62  ;;  %3369 = vmatpush3.bf16.msra.mxu0 %v4031_v62 }
 0x105   :  { %3344 = vmatprep.subr.bf16.mxu1 %v4023_v61  ;;  %3370 = vmatprep.subr.bf16.mxu0 %v4023_v61 }
 0x108   :  { %3345 = vmatpush3.bf16.msra.mxu1 %v4023_v61  ;;  %3371 = vmatpush3.bf16.msra.mxu0 %v4023_v61 }
 0x109   :  { %3346 = vmatprep.subr.bf16.mxu1 %v4039_v4  ;;  %3372 = vmatprep.subr.bf16.mxu0 %v4039_v4 }
 0x10c   :  { %3347 = vmatpush3.bf16.msra.mxu1 %v4039_v4  ;;  %3373 = vmatpush3.bf16.msra.mxu0 %v4039_v4 }
 0x10d   :  { %3348 = vmatprep.subr.bf16.mxu1 %v4047_v9  ;;  %3374 = vmatprep.subr.bf16.mxu0 %v4047_v9 }
 0x110   :  { %3349 = vmatpush3.bf16.msra.mxu1 %v4047_v9  ;;  %3375 = vmatpush3.bf16.msra.mxu0 %v4047_v9 }
 0x111   :  { %3350 = vmatprep.subr.bf16.mxu1 %v4054_v13  ;;  %3376 = vmatprep.subr.bf16.mxu0 %v4054_v13 }
 0x114   :  { %3351 = vmatpush3.bf16.msra.mxu1 %v4054_v13  ;;  %3377 = vmatpush3.bf16.msra.mxu0 %v4054_v13 }
 0x115   :  { %3352 = vmatprep.subr.bf16.mxu1 %v4060_v15  ;;  %3378 = vmatprep.subr.bf16.mxu0 %v4060_v15 }
 0x118   :  { %3353 = vmatpush3.bf16.msra.mxu1 %v4060_v15  ;;  %3379 = vmatpush3.bf16.msra.mxu0 %v4060_v15 }
 0x119   :  { %3354 = vmatprep.subr.bf16.mxu1 %v4013_v26  ;;  %3380 = vmatprep.subr.bf16.mxu0 %v4013_v26 }
 0x11c   :  { %3355 = vmatpush3.bf16.msra.mxu1 %v4013_v26  ;;  %3381 = vmatpush3.bf16.msra.mxu0 %v4013_v26 }
 0x11d   :  { %3412 = vmatprep.subr.bf16.mxu0 %v3832_v16  ;;  %3360 = vmatprep.subr.bf16.mxu1 %v3835_v20 }
 0x11f   :  { %3357 = vmatmul.mubr.msk.bf16.vlgmr.msra.gmra.mxu1 %vm263_vm4, %v3830_v17  ;;  %3383 = vmatmul.mubr.msk.bf16.vlgmr.msra.gmra.mxu0 %vm263_vm4, %v3833_v18 }
 0x120   :  { %3413 = vmatpush3.bf16.msra.mxu0 %v3832_v16  ;;  %3361 = vmatpush3.bf16.msra.mxu1 %v3835_v20 }
 0x121   :  { %3414 = vmatprep.subr.bf16.mxu0 %v3834_v19  ;;  %3362 = vmatprep.subr.bf16.mxu1 %v3836_v21 }
 0x124   :  { %3415 = vmatpush3.bf16.msra.mxu0 %v3834_v19  ;;  %3363 = vmatpush3.bf16.msra.mxu1 %v3836_v21 }
 0x125   :  { %3811 = vmatprep.subr.msk.bf16.mxu0 %vm270_vm5, %v4020_v57  ;;  %3386 = vmatprep.subr.bf16.mxu1 %v3837_v22 }
 0x1df   :  { %v3358_v23 = vpop.f32.mrf.mxu1  ;;  %v3384_v24 = vpop.f32.mrf.mxu0 }
 0x1e0   :  { %v323_v34 = vpack.c.bf16 %v3358_v23, %v3358_v23  ;;  %v465_v37 = vpack.c.bf16 %v3384_v24, %v3384_v24  ;;  %v3849_v24 = vld [vmem:[%s4680_s6 + $0x58] sm:$0xff]  }
 0x1e1   :  { %v308_v25 = vpop.f32.mrf.mxu1  ;;  %v450_v27 = vpop.f32.mrf.mxu0 }
 0x1e3   :  { %v3359_v28 = vpop.f32.mrf.mxu1  ;;  %v3385_v29 = vpop.f32.mrf.mxu0 }
 0x1e5   :  { %v311_v30 = vpop.f32.mrf.mxu1  ;;  %v453_v31 = vpop.f32.mrf.mxu0 }
 0x1e6   :  { %v322_v32 = vpack.c.bf16 %v311_v30, %v308_v25  ;;  %v464_v33 = vpack.c.bf16 %v453_v31, %v450_v27  ;;  %v3848_v25 = vld [vmem:[%s4679_s3 + $0x38] ss:$0 sps:$4 sm:$0x11]   ;;  %v3850_v27 = vld [vmem:[%s4680_s6 + $0x50] sm:$0xff]  }
 0x1e8   :  { %3364 = vmatprep.mubr.msk.bf16.mxu1 %vm340_vm6, %v322_v32 }
 0x1e9   :  { %3365 = vmatmul.mubr.msk.bf16.vlgmr.msra.gmra.mxu1 %vm340_vm6, %v323_v34 }
 0x1ea   :  { %3387 = vmatpush3.bf16.msra.mxu1 %v3837_v22  ;;  %3390 = vmatprep.mubr.msk.bf16.mxu1 %vm340_vm6, %v464_v33  ;;  %v3847_v22 = vld [vmem:[%s4679_s3 + $0x30] sm:$0xff]  }
 0x1eb   :  { %3388 = vmatprep.subr.bf16.mxu1 %v3838_v35 }
 0x1ee   :  { %3389 = vmatpush3.bf16.msra.mxu1 %v3838_v35 }
 0x1ef   :  { %3810 = vmatprep.subr.msk.bf16.mxu1 %vm270_vm5, %v4020_v57 }
 0x1f1   :  { %3391 = vmatmul.mubr.msk.bf16.vlgmr.msra.gmra.mxu1 %vm340_vm6, %v465_v37 }
 0x1f2   :  { %3395 = vmatpush3.bf16.msra.mxu1 %v4031_v62  ;;  %3408 = vmatprep.mubr.msk.bf16.mxu1 %vm263_vm4, %v3839_v36 }
 0x1f3   :  { %3396 = vmatprep.subr.bf16.mxu1 %v4023_v61 }
 0x1f6   :  { %3397 = vmatpush3.bf16.msra.mxu1 %v4023_v61 }
 0x1f7   :  { %3398 = vmatprep.subr.bf16.mxu1 %v4039_v4 }
 0x1fa   :  { %3399 = vmatpush3.bf16.msra.mxu1 %v4039_v4 }
 0x1fb   :  { %3400 = vmatprep.subr.bf16.mxu1 %v4047_v9 }
 0x1fe   :  { %3401 = vmatpush3.bf16.msra.mxu1 %v4047_v9 }
 0x1ff   :  { %3402 = vmatprep.subr.bf16.mxu1 %v4054_v13 }
 0x202   :  { %3403 = vmatpush3.bf16.msra.mxu1 %v4054_v13 }
 0x203   :  { %3404 = vmatprep.subr.bf16.mxu1 %v4060_v15 }
 0x206   :  { %3405 = vmatpush3.bf16.msra.mxu1 %v4060_v15 }
 0x207   :  { %3406 = vmatprep.subr.bf16.mxu1 %v4013_v26 }
 0x20a   :  { %3407 = vmatpush3.bf16.msra.mxu1 %v4013_v26 }
 0x20b   :  { %3438 = vmatprep.subr.bf16.mxu1 %v3841_v38 }
 0x20d   :  { %3409 = vmatmul.mubr.msk.bf16.vlgmr.msra.gmra.mxu1 %vm263_vm4, %v3840_v39 }
 0x20e   :  { %3439 = vmatpush3.bf16.msra.mxu1 %v3841_v38 }
 0x20f   :  { %3440 = vmatprep.subr.bf16.mxu1 %v3842_v40 }
 0x212   :  { %3441 = vmatpush3.bf16.msra.mxu1 %v3842_v40  ;;  %v3851_v40 = vld [vmem:[%s4679_s3 + $0x3c] sm:$0xff]  }
 0x213   :  { %3812 = vmatprep.subr.msk.bf16.mxu1 %vm270_vm5, %v4020_v57 }
 0x2a9   :  { %v3366_v41 = vpop.f32.mrf.mxu1 }
 0x2aa   :  { %v397_v46 = vadd.f32 %v3366_v41, %v2871_v43 }
 0x2ab   :  { %v381_v42 = vpop.f32.mrf.mxu1 }
 0x2ac   :  { %v395_v48 = vadd.f32 %v2871_v43, %v381_v42  ;;  %v3853_v42 = vld [vmem:[%s4680_s6 + $0x68] sm:$0xff]  }
 0x2ad   :  { %v3367_v44 = vpop.f32.mrf.mxu1 }
 0x2ae   :  { %v3854_v44 = vld [vmem:[%s4680_s6 + $0x60] sm:$0xff]  }
 0x2af   :  { %v384_v45 = vpop.f32.mrf.mxu1 }
 0x2b0   :  { %v396_v53 = vadd.f32 %v2871_v43, %v384_v45  ;;  %v3852_v43 = vld [vmem:[%s4679_s3 + $0x44] ss:$0 sps:$4 sm:$0x11]  }
 0x2b1   :  { %v3392_v47 = vpop.f32.mrf.mxu1 }
 0x2b2   :  { %v539_v49 = vadd.f32 %v3392_v47, %v397_v46 }
 0x2b3   :  { %v523_v50 = vpop.f32.mrf.mxu1 }
 0x2b4   :  { %v537_v51 = vadd.f32 %v523_v50, %v395_v48 }
 0x2b5   :  { %v3393_v52 = vpop.f32.mrf.mxu1 }
 0x2b7   :  { %v526_v54 = vpop.f32.mrf.mxu1 }
 0x2b8   :  { %v538_v55 = vadd.f32 %v526_v54, %v396_v53 }
 0x2cd   :  { %v3410_v56 = vpop.f32.mrf.mxu1 }
 0x2ce   :  { %v607_v2 = vpack.c.bf16 %v3410_v56, %v3410_v56 }
 0x2cf   :  { %v592_v58 = vpop.f32.mrf.mxu1 }
 0x2d1   :  { %v3411_v59 = vpop.f32.mrf.mxu1 }
 0x2d3   :  { %v595_v60 = vpop.f32.mrf.mxu1 }
 0x2d4   :  { %v606_v63 = vpack.c.bf16 %v595_v60, %v592_v58  ;;  %v3855_v58 = vld [vmem:[%s4679_s3 + $0x48] sm:$0xff]   ;;  %v3857_v60 = vld [vmem:[%s4680_s6 + $0x78] sm:$0xff]  }
 0x2d6   :  { %3416 = vmatprep.mubr.msk.bf16.mxu0 %vm340_vm6, %v606_v63  ;;  %v3856_v63 = vld [vmem:[%s4679_s3 + $0x50] ss:$0 sps:$4 sm:$0x11]  }
 0x2d7   :  { %3417 = vmatmul.mubr.msk.bf16.vlgmr.msra.gmra.mxu0 %vm340_vm6, %v607_v2 }
 0x2d8   :  { %3421 = vmatpush3.bf16.msra.mxu0 %v4031_v62  ;;  %3434 = vmatprep.mubr.msk.bf16.mxu0 %vm263_vm4, %v3843_v1  ;;  %v3858_v1 = vld [vmem:[%s4680_s6 + $0x70] sm:$0xff]  }
 0x2d9   :  { %3422 = vmatprep.subr.bf16.mxu0 %v4023_v61 }
 0x2dc   :  { %3423 = vmatpush3.bf16.msra.mxu0 %v4023_v61 }
 0x2dd   :  { %3424 = vmatprep.subr.bf16.mxu0 %v4039_v4 }
 0x2e0   :  { %3425 = vmatpush3.bf16.msra.mxu0 %v4039_v4 }
 0x2e1   :  { %3426 = vmatprep.subr.bf16.mxu0 %v4047_v9 }
 0x2e4   :  { %3427 = vmatpush3.bf16.msra.mxu0 %v4047_v9 }
 0x2e5   :  { %3428 = vmatprep.subr.bf16.mxu0 %v4054_v13 }
 0x2e8   :  { %3429 = vmatpush3.bf16.msra.mxu0 %v4054_v13 }
 0x2e9   :  { %3430 = vmatprep.subr.bf16.mxu0 %v4060_v15 }
 0x2ec   :  { %3431 = vmatpush3.bf16.msra.mxu0 %v4060_v15 }
 0x2ed   :  { %3432 = vmatprep.subr.bf16.mxu0 %v4013_v26 }
 0x2f0   :  { %3433 = vmatpush3.bf16.msra.mxu0 %v4013_v26 }
 0x2f1   :  { %3464 = vmatprep.subr.bf16.mxu0 %v3845_v3 }
 0x2f3   :  { %3435 = vmatmul.mubr.msk.bf16.vlgmr.msra.gmra.mxu0 %vm263_vm4, %v3844_v5 }
 0x2f4   :  { %3465 = vmatpush3.bf16.msra.mxu0 %v3845_v3 }
 0x2f5   :  { %3466 = vmatprep.subr.bf16.mxu0 %v3846_v6 }
 0x2f8   :  { %3467 = vmatpush3.bf16.msra.mxu0 %v3846_v6 }
 0x2f9   :  { %3813 = vmatprep.subr.msk.bf16.mxu0 %vm270_vm5, %v4020_v57 }
 0x397   :  { %v3418_v7 = vpop.f32.mrf.mxu0 }
 0x398   :  { %v681_v8 = vadd.f32 %v3418_v7, %v539_v49 }
 0x399   :  { %v665_v10 = vpop.f32.mrf.mxu0 }
 0x39a   :  { %v679_v11 = vadd.f32 %v665_v10, %v537_v51 }
 0x39b   :  { %v3419_v12 = vpop.f32.mrf.mxu0 }
 0x39d   :  { %v668_v14 = vpop.f32.mrf.mxu0 }
 0x39e   :  { %v680_v16 = vadd.f32 %v668_v14, %v538_v55 }
 0x3b3   :  { %v3436_v17 = vpop.f32.mrf.mxu0 }
 0x3b4   :  { %v749_v23 = vpack.c.bf16 %v3436_v17, %v3436_v17 }
 0x3b5   :  { %v734_v18 = vpop.f32.mrf.mxu0 }
 0x3b7   :  { %v3437_v19 = vpop.f32.mrf.mxu0 }
 0x3b9   :  { %v737_v20 = vpop.f32.mrf.mxu0 }
 0x3ba   :  { %v748_v21 = vpack.c.bf16 %v737_v20, %v734_v18  ;;  %v3859_v18 = vld [vmem:[%s4679_s3 + $0x54] sm:$0xff]  }
 0x3bc   :  { %3442 = vmatprep.mubr.msk.bf16.mxu1 %vm340_vm6, %v748_v21 }
 0x3bd   :  { %3443 = vmatmul.mubr.msk.bf16.vlgmr.msra.gmra.mxu1 %vm340_vm6, %v749_v23 }
 0x3be   :  { %3447 = vmatpush3.bf16.msra.mxu1 %v4031_v62  ;;  %3460 = vmatprep.mubr.msk.bf16.mxu1 %vm263_vm4, %v3847_v22 }
 0x3bf   :  { %3448 = vmatprep.subr.bf16.mxu1 %v4023_v61 }
 0x3c2   :  { %3449 = vmatpush3.bf16.msra.mxu1 %v4023_v61 }
 0x3c3   :  { %3450 = vmatprep.subr.bf16.mxu1 %v4039_v4 }
 0x3c6   :  { %3451 = vmatpush3.bf16.msra.mxu1 %v4039_v4 }
 0x3c7   :  { %3452 = vmatprep.subr.bf16.mxu1 %v4047_v9 }
 0x3ca   :  { %3453 = vmatpush3.bf16.msra.mxu1 %v4047_v9 }
 0x3cb   :  { %3454 = vmatprep.subr.bf16.mxu1 %v4054_v13 }
 0x3ce   :  { %3455 = vmatpush3.bf16.msra.mxu1 %v4054_v13 }
 0x3cf   :  { %3456 = vmatprep.subr.bf16.mxu1 %v4060_v15 }
 0x3d2   :  { %3457 = vmatpush3.bf16.msra.mxu1 %v4060_v15 }
 0x3d3   :  { %3458 = vmatprep.subr.bf16.mxu1 %v4013_v26 }
 0x3d6   :  { %3459 = vmatpush3.bf16.msra.mxu1 %v4013_v26 }
 0x3d7   :  { %3490 = vmatprep.subr.bf16.mxu1 %v3849_v24 }
 0x3d9   :  { %3461 = vmatmul.mubr.msk.bf16.vlgmr.msra.gmra.mxu1 %vm263_vm4, %v3848_v25 }
 0x3da   :  { %3491 = vmatpush3.bf16.msra.mxu1 %v3849_v24 }
 0x3db   :  { %3492 = vmatprep.subr.bf16.mxu1 %v3850_v27 }
 0x3de   :  { %3493 = vmatpush3.bf16.msra.mxu1 %v3850_v27 }
 0x3df   :  { %3814 = vmatprep.subr.msk.bf16.mxu1 %vm270_vm5, %v4020_v57 }
 0x47d   :  { %v3444_v28 = vpop.f32.mrf.mxu1 }
 0x47e   :  { %v823_v29 = vadd.f32 %v3444_v28, %v681_v8 }
 0x47f   :  { %v807_v30 = vpop.f32.mrf.mxu1 }
 0x480   :  { %v821_v31 = vadd.f32 %v807_v30, %v679_v11 }
 0x481   :  { %v3445_v32 = vpop.f32.mrf.mxu1 }
 0x483   :  { %v810_v33 = vpop.f32.mrf.mxu1 }
 0x484   :  { %v822_v34 = vadd.f32 %v810_v33, %v680_v16  ;;  %v3861_v33 = vld [vmem:[%s4679_s3 + $0x60] sm:$0xff]  }
 0x499   :  { %v3462_v35 = vpop.f32.mrf.mxu1 }
 0x49a   :  { %v891_v41 = vpack.c.bf16 %v3462_v35, %v3462_v35 }
 0x49b   :  { %v876_v36 = vpop.f32.mrf.mxu1 }
 0x49d   :  { %v3463_v37 = vpop.f32.mrf.mxu1 }
 0x49f   :  { %v879_v38 = vpop.f32.mrf.mxu1 }
 0x4a0   :  { %v890_v39 = vpack.c.bf16 %v879_v38, %v876_v36 }
 0x4a2   :  { %3468 = vmatprep.mubr.msk.bf16.mxu0 %vm340_vm6, %v890_v39 }
 0x4a3   :  { %3469 = vmatmul.mubr.msk.bf16.vlgmr.msra.gmra.mxu0 %vm340_vm6, %v891_v41 }
 0x4a4   :  { %3473 = vmatpush3.bf16.msra.mxu0 %v4031_v62  ;;  %3486 = vmatprep.mubr.msk.bf16.mxu0 %vm263_vm4, %v3851_v40 }
 0x4a5   :  { %3474 = vmatprep.subr.bf16.mxu0 %v4023_v61 }
 0x4a8   :  { %3475 = vmatpush3.bf16.msra.mxu0 %v4023_v61 }
 0x4a9   :  { %3476 = vmatprep.subr.bf16.mxu0 %v4039_v4 }
 0x4ac   :  { %3477 = vmatpush3.bf16.msra.mxu0 %v4039_v4 }
 0x4ad   :  { %3478 = vmatprep.subr.bf16.mxu0 %v4047_v9 }
 0x4b0   :  { %3479 = vmatpush3.bf16.msra.mxu0 %v4047_v9 }
 0x4b1   :  { %3480 = vmatprep.subr.bf16.mxu0 %v4054_v13 }
 0x4b4   :  { %3481 = vmatpush3.bf16.msra.mxu0 %v4054_v13 }
 0x4b5   :  { %3482 = vmatprep.subr.bf16.mxu0 %v4060_v15 }
 0x4b8   :  { %3483 = vmatpush3.bf16.msra.mxu0 %v4060_v15 }
 0x4b9   :  { %3484 = vmatprep.subr.bf16.mxu0 %v4013_v26 }
 0x4bc   :  { %3485 = vmatpush3.bf16.msra.mxu0 %v4013_v26 }
 0x4bd   :  { %3516 = vmatprep.subr.bf16.mxu0 %v3853_v42 }
 0x4bf   :  { %3487 = vmatmul.mubr.msk.bf16.vlgmr.msra.gmra.mxu0 %vm263_vm4, %v3852_v43 }
 0x4c0   :  { %3517 = vmatpush3.bf16.msra.mxu0 %v3853_v42 }
 0x4c1   :  { %3518 = vmatprep.subr.bf16.mxu0 %v3854_v44 }
 0x4c4   :  { %3519 = vmatpush3.bf16.msra.mxu0 %v3854_v44  ;;  %v3865_v44 = vld [vmem:[%s4680_s6 + $0x98] sm:$0xff]  }
 0x4c5   :  { %3815 = vmatprep.subr.msk.bf16.mxu0 %vm270_vm5, %v4020_v57 }
 0x563   :  { %v3470_v45 = vpop.f32.mrf.mxu0 }
 0x564   :  { %v965_v46 = vadd.f32 %v3470_v45, %v823_v29 }
 0x565   :  { %v949_v47 = vpop.f32.mrf.mxu0 }
 0x566   :  { %v963_v48 = vadd.f32 %v949_v47, %v821_v31 }
 0x567   :  { %v3471_v49 = vpop.f32.mrf.mxu0 }
 0x569   :  { %v952_v50 = vpop.f32.mrf.mxu0 }
 0x56a   :  { %v964_v51 = vadd.f32 %v952_v50, %v822_v34 }
 0x57f   :  { %v3488_v52 = vpop.f32.mrf.mxu0 }
 0x580   :  { %v1033_v59 = vpack.c.bf16 %v3488_v52, %v3488_v52 }
 0x581   :  { %v1018_v53 = vpop.f32.mrf.mxu0 }
 0x583   :  { %v3489_v54 = vpop.f32.mrf.mxu0 }
 0x585   :  { %v1021_v55 = vpop.f32.mrf.mxu0 }
 0x586   :  { %v1032_v56 = vpack.c.bf16 %v1021_v55, %v1018_v53 }
 0x588   :  { %3494 = vmatprep.mubr.msk.bf16.mxu1 %vm340_vm6, %v1032_v56 }
 0x589   :  { %3495 = vmatmul.mubr.msk.bf16.vlgmr.msra.gmra.mxu1 %vm340_vm6, %v1033_v59  ;;  %v1543_v59 = vld [vmem:[%s4682_s4] sm:$0x1] }
 0x58a   :  { %3499 = vmatpush3.bf16.msra.mxu1 %v4031_v62  ;;  %3512 = vmatprep.mubr.msk.bf16.mxu1 %vm263_vm4, %v3855_v58 }
 0x58b   :  { %3500 = vmatprep.subr.bf16.mxu1 %v4023_v61 }
 0x58e   :  { %3501 = vmatpush3.bf16.msra.mxu1 %v4023_v61 }
 0x58f   :  { %3502 = vmatprep.subr.bf16.mxu1 %v4039_v4 }
 0x592   :  { %3503 = vmatpush3.bf16.msra.mxu1 %v4039_v4 }
 0x593   :  { %3504 = vmatprep.subr.bf16.mxu1 %v4047_v9 }
 0x596   :  { %3505 = vmatpush3.bf16.msra.mxu1 %v4047_v9 }
 0x597   :  { %3506 = vmatprep.subr.bf16.mxu1 %v4054_v13 }
 0x59a   :  { %3507 = vmatpush3.bf16.msra.mxu1 %v4054_v13 }
 0x59b   :  { %3508 = vmatprep.subr.bf16.mxu1 %v4060_v15 }
 0x59e   :  { %3509 = vmatpush3.bf16.msra.mxu1 %v4060_v15 }
 0x59f   :  { %3510 = vmatprep.subr.bf16.mxu1 %v4013_v26 }
 0x5a2   :  { %3511 = vmatpush3.bf16.msra.mxu1 %v4013_v26 }
 0x5a3   :  { %3542 = vmatprep.subr.bf16.mxu1 %v3857_v60 }
 0x5a5   :  { %3513 = vmatmul.mubr.msk.bf16.vlgmr.msra.gmra.mxu1 %vm263_vm4, %v3856_v63  ;;  %v3018_v63 = vld [vmem:[%s4682_s4 + $0x2] sm:$0x1] }
 0x5a6   :  { %3543 = vmatpush3.bf16.msra.mxu1 %v3857_v60  ;;  %v3009_v60 = vld [vmem:[%s4682_s4 + $0x1] sm:$0x1] }
 0x5a7   :  { %3544 = vmatprep.subr.bf16.mxu1 %v3858_v1 }
 0x5aa   :  { %3545 = vmatpush3.bf16.msra.mxu1 %v3858_v1  ;;  %v3027_v1 = vld [vmem:[%s4682_s4 + $0x3] sm:$0x1] }
 0x5ab   :  { %3816 = vmatprep.subr.msk.bf16.mxu1 %vm270_vm5, %v4020_v57  ;;  %v3860_v57 = vld [vmem:[%s4679_s3 + $0x5c] ss:$0 sps:$4 sm:$0x11]  }
 0x649   :  { %v3496_v2 = vpop.f32.mrf.mxu1 }
 0x64a   :  { %v1107_v3 = vadd.f32 %v3496_v2, %v965_v46  ;;  %v3036_v2 = vld [vmem:[%s4682_s4 + $0x4] sm:$0x1] }
 0x64b   :  { %v1091_v5 = vpop.f32.mrf.mxu1 }
 0x64c   :  { %v1105_v6 = vadd.f32 %v1091_v5, %v963_v48  ;;  %v3054_v5 = vld [vmem:[%s4682_s4 + $0x6] sm:$0x1] }
 0x64d   :  { %v3497_v7 = vpop.f32.mrf.mxu1 }
 0x64e   :  { %v3072_v7 = vld [vmem:[%s4682_s4 + $0x8] sm:$0x1] }
 0x64f   :  { %v1094_v8 = vpop.f32.mrf.mxu1 }
 0x650   :  { %v1106_v10 = vadd.f32 %v1094_v8, %v964_v51  ;;  %v3866_v8 = vld [vmem:[%s4680_s6 + $0x90] sm:$0xff]  }
 0x665   :  { %v3514_v11 = vpop.f32.mrf.mxu1 }
 0x666   :  { %v1175_v19 = vpack.c.bf16 %v3514_v11, %v3514_v11  ;;  %v3867_v11 = vld [vmem:[%s4680_s6 + $0xa8] sm:$0xff]  }
 0x667   :  { %v1160_v12 = vpop.f32.mrf.mxu1 }
 0x669   :  { %v3515_v14 = vpop.f32.mrf.mxu1 }
 0x66b   :  { %v1163_v16 = vpop.f32.mrf.mxu1 }
 0x66c   :  { %v1174_v17 = vpack.c.bf16 %v1163_v16, %v1160_v12 }
 0x66e   :  { %3520 = vmatprep.mubr.msk.bf16.mxu0 %vm340_vm6, %v1174_v17  ;;  %v3868_v17 = vld [vmem:[%s4680_s6 + $0xa0] sm:$0xff]  }
 0x66f   :  { %3521 = vmatmul.mubr.msk.bf16.vlgmr.msra.gmra.mxu0 %vm340_vm6, %v1175_v19 }
 0x670   :  { %3525 = vmatpush3.bf16.msra.mxu0 %v4031_v62  ;;  %3538 = vmatprep.mubr.msk.bf16.mxu0 %vm263_vm4, %v3859_v18 }
 0x671   :  { %3526 = vmatprep.subr.bf16.mxu0 %v4023_v61 }
 0x674   :  { %3527 = vmatpush3.bf16.msra.mxu0 %v4023_v61 }
 0x675   :  { %3528 = vmatprep.subr.bf16.mxu0 %v4039_v4 }
 0x678   :  { %3529 = vmatpush3.bf16.msra.mxu0 %v4039_v4 }
 0x679   :  { %3530 = vmatprep.subr.bf16.mxu0 %v4047_v9 }
 0x67c   :  { %3531 = vmatpush3.bf16.msra.mxu0 %v4047_v9 }
 0x67d   :  { %3532 = vmatprep.subr.bf16.mxu0 %v4054_v13 }
 0x680   :  { %3533 = vmatpush3.bf16.msra.mxu0 %v4054_v13 }
 0x681   :  { %3534 = vmatprep.subr.bf16.mxu0 %v4060_v15 }
 0x684   :  { %3535 = vmatpush3.bf16.msra.mxu0 %v4060_v15 }
 0x685   :  { %3536 = vmatprep.subr.bf16.mxu0 %v4013_v26 }
 0x688   :  { %3537 = vmatpush3.bf16.msra.mxu0 %v4013_v26 }
 0x68b   :  { %3539 = vmatmul.mubr.msk.bf16.vlgmr.msra.gmra.mxu0 %vm263_vm4, %v3860_v57  ;;  %v3869_v57 = vld [vmem:[%s4680_s6 + $0xb8] sm:$0xff]  }
 0x72f   :  { %v3522_v20 = vpop.f32.mrf.mxu0 }
 0x730   :  { %v1249_v21 = vadd.f32 %v3522_v20, %v1107_v3  ;;  %v3045_v3 = vld [vmem:[%s4682_s4 + $0x5] sm:$0x1] }
 0x731   :  { %v1233_v22 = vpop.f32.mrf.mxu0 }
 0x732   :  { %v1247_v23 = vadd.f32 %v1233_v22, %v1105_v6  ;;  %v3063_v6 = vld [vmem:[%s4682_s4 + $0x7] sm:$0x1] }
 0x733   :  { %v3523_v24 = vpop.f32.mrf.mxu0 }
 0x735   :  { %v1236_v25 = vpop.f32.mrf.mxu0 }
 0x736   :  { %v1248_v27 = vadd.f32 %v1236_v25, %v1106_v10 }
 0x74b   :  { %v3540_v28 = vpop.f32.mrf.mxu0 }
 0x74c   :  { %v1317_v34 = vpack.c.bf16 %v3540_v28, %v3540_v28 }
 0x74d   :  { %v1302_v29 = vpop.f32.mrf.mxu0 }
 0x74f   :  { %v3541_v30 = vpop.f32.mrf.mxu0 }
 0x751   :  { %v1305_v31 = vpop.f32.mrf.mxu0 }
 0x752   :  { %v1316_v32 = vpack.c.bf16 %v1305_v31, %v1302_v29  ;;  %v3872_v31 = vld [vmem:[%s4680_s6 + $0xc0] sm:$0xff]  }
 0x754   :  { %3546 = vmatprep.mubr.msk.bf16.mxu1 %vm340_vm6, %v1316_v32 }
 0x755   :  { %3547 = vmatmul.mubr.msk.bf16.vlgmr.msra.gmra.mxu1 %vm340_vm6, %v1317_v34  ;;  %v3873_v34 = vld [vmem:[%s4680_s6 + $0xd8] sm:$0xff]  }
 0x756   :  { %3551 = vmatpush3.bf16.msra.mxu1 %v4031_v62  ;;  %3564 = vmatprep.mubr.msk.bf16.mxu1 %vm263_vm4, %v3861_v33  ;;  %v3863_v62 = vld [vmem:[%s4680_s6 + $0x88] sm:$0xff]  }
 0x757   :  { %3552 = vmatprep.subr.bf16.mxu1 %v4023_v61  ;;  %3568 = vmatprep.subr.bf16.mxu0 %v3863_v62 }
 0x758   :  { %3569 = vmatpush3.bf16.msra.mxu0 %v3863_v62 }
 0x75a   :  { %3553 = vmatpush3.bf16.msra.mxu1 %v4023_v61  ;;  %v3862_v61 = vld [vmem:[%s4679_s3 + $0x68] ss:$0 sps:$4 sm:$0x11]  }
 0x75b   :  { %3554 = vmatprep.subr.bf16.mxu1 %v4039_v4 }
 0x75e   :  { %3555 = vmatpush3.bf16.msra.mxu1 %v4039_v4  ;;  %v3864_v4 = vld [vmem:[%s4680_s6 + $0x80] sm:$0xff]  }
 0x75f   :  { %3556 = vmatprep.subr.bf16.mxu1 %v4047_v9  ;;  %3570 = vmatprep.subr.bf16.mxu0 %v3864_v4 }
 0x760   :  { %3571 = vmatpush3.bf16.msra.mxu0 %v3864_v4 }
 0x761   :  { %3576 = vmatprep.subr.bf16.mxu0 %v3885_v0 }
 0x762   :  { %3557 = vmatpush3.bf16.msra.mxu1 %v4047_v9 }
 0x763   :  { %3558 = vmatprep.subr.bf16.mxu1 %v4054_v13 }
 0x766   :  { %3559 = vmatpush3.bf16.msra.mxu1 %v4054_v13 }
 0x767   :  { %3560 = vmatprep.subr.bf16.mxu1 %v4060_v15 }
 0x76a   :  { %3561 = vmatpush3.bf16.msra.mxu1 %v4060_v15 }
 0x76b   :  { %3562 = vmatprep.subr.bf16.mxu1 %v4013_v26 }
 0x76e   :  { %3563 = vmatpush3.bf16.msra.mxu1 %v4013_v26 }
 0x76f   :  { %3584 = vmatprep.subr.bf16.mxu1 %v3885_v0 }
 0x771   :  { %3565 = vmatmul.mubr.msk.bf16.vlgmr.msra.gmra.mxu1 %vm263_vm4, %v3862_v61 }
 0x772   :  { %3588 = vmatprep.mubr.msk.bf16.mxu1 %vm3887_vm2, %v3885_v0  ;;  %3585 = vmatpush3.bf16.msra.mxu1 %v3865_v44 }
 0x773   :  { %3586 = vmatprep.subr.bf16.mxu1 %v3885_v0 }
 0x776   :  { %3587 = vmatpush3.bf16.msra.mxu1 %v3866_v8  ;;  %v2512_v8 = vld [vmem:[%s4683_s7 + $0x10] sm:$0xff] }
 0x777   :  { %3600 = vmatprep.subr.bf16.mxu1 %v3885_v0 }
 0x815   :  { %v3548_v26 = vpop.f32.mrf.mxu1 }
 0x816   :  { %v1391_v9 = vadd.f32 %v3548_v26, %v1249_v21  ;;  %v3874_v26 = vld [vmem:[%s4680_s6 + $0xd0] sm:$0xff]  }
 0x817   :  { %v1375_v13 = vpop.f32.mrf.mxu1 }
 0x818   :  { %v1389_v15 = vadd.f32 %v1375_v13, %v1247_v23  ;;  %v3870_v23 = vld [vmem:[%s4680_s6 + $0xb0] sm:$0xff]  }
 0x819   :  { %v3549_v35 = vpop.f32.mrf.mxu1 }
 0x81b   :  { %v1378_v36 = vpop.f32.mrf.mxu1 }
 0x81c   :  { %v1390_v37 = vadd.f32 %v1378_v36, %v1248_v27  ;;  %v3871_v27 = vld [vmem:[%s4680_s6 + $0xc8] sm:$0xff]  }
 0x831   :  { %v3566_v38 = vpop.f32.mrf.mxu1 }
 0x832   :  { %v1459_v43 = vpack.c.bf16 %v3566_v38, %v3566_v38  ;;  %v3876_v38 = vld [vmem:[%s4680_s6 + $0xe0] sm:$0xff]  }
 0x833   :  { %v1444_v39 = vpop.f32.mrf.mxu1 }
 0x835   :  { %v3567_v40 = vpop.f32.mrf.mxu1 }
 0x837   :  { %v1447_v41 = vpop.f32.mrf.mxu1 }
 0x838   :  { %v1458_v42 = vpack.c.bf16 %v1447_v41, %v1444_v39  ;;  %v3877_v41 = vld [vmem:[%s4680_s6 + $0xf8] sm:$0xff]  }
 0x83a   :  { %3572 = vmatprep.mubr.msk.bf16.mxu0 %vm340_vm6, %v1458_v42 }
 0x83b   :  { %3573 = vmatmul.mubr.msk.bf16.vlgmr.msra.gmra.mxu0 %vm340_vm6, %v1459_v43 }
 0x83c   :  { %3580 = vmatprep.mubr.msk.bf16.mxu0 %vm3887_vm2, %v3885_v0 }
 0x8fb   :  { %v3574_v45 = vpop.f32.mrf.mxu0 }
 0x8fc   :  { %v1533_v46 = vadd.f32 %v3574_v45, %v1391_v9  ;;  %v3878_v45 = vld [vmem:[%s4680_s6 + $0xf0] sm:$0xff]  }
 0x8fd   :  { %v1517_v47 = vpop.f32.mrf.mxu0 }
 0x8fe   :  { %v1536_v48 = vmax.f32 %v1533_v46, 0.0  ;;  %v1531_v51 = vadd.f32 %v1517_v47, %v1389_v15  ;;  %v3875_v15 = vld [vmem:[%s4680_s6 + $0xe8] sm:$0xff]  }
 0x8ff   :  { %v3575_v49 = vpop.f32.mrf.mxu0 }
 0x900   :  { %v1538_v50 = vpack.c.bf16 %v1536_v48, %v1536_v48  ;;  %v1534_v55 = vmax.f32 %v1531_v51, 0.0  ;;  %v3879_v48 = vld [vmem:[%s4680_s6 + $0x108] sm:$0xff]  }
 0x901   :  { %v1520_v52 = vpop.f32.mrf.mxu0 }
 0x902   :  { %v1549_v53 = vsel %vm270_vm5, %v1538_v50, 0  ;;  %v1532_v54 = vadd.f32 %v1520_v52, %v1390_v37  ;;  %v3880_v52 = vld [vmem:[%s4680_s6 + $0x100] sm:$0xff]  }
 0x903   :  { %3577 = vmatpush3.bf16.msra.mxu0 %v1549_v53 }
 0x904   :  { %v1535_v56 = vmax.f32 %v1532_v54, 0.0  ;;  %3578 = vmatprep.subr.bf16.mxu0 %v3885_v0 }
 0x906   :  { %v1537_v58 = vpack.c.bf16 %v1535_v56, %v1534_v55  ;;  %v3881_v55 = vld [vmem:[%s4680_s6 + $0x118] sm:$0xff]  }
 0x908   :  { %3579 = vmatpush3.bf16.msra.mxu0 %v1537_v58 }
 0x909   :  { %3592 = vmatprep.subr.bf16.mxu0 %v3885_v0 }
 0x90b   :  { %3581 = vmatmul.mubr.msk.bf16.vlgmr.msra.gmra.mxu0 %vm1544_vm7, %v1543_v59 }
 0x90c   :  { %3593 = vmatpush3.bf16.msra.mxu0 %v1549_v53  ;;  %3596 = vmatprep.mubr.msk.bf16.mxu0 %vm3887_vm2, %v3885_v0 }
 0x90d   :  { %3594 = vmatprep.subr.bf16.mxu0 %v3885_v0 }
 0x910   :  { %3595 = vmatpush3.bf16.msra.mxu0 %v1537_v58 }
 0x911   :  { %3608 = vmatprep.subr.bf16.mxu0 %v3885_v0 }
 0x913   :  { %3597 = vmatmul.mubr.msk.bf16.vlgmr.msra.gmra.mxu0 %vm1544_vm7, %v3009_v60  ;;  %v3882_v60 = vld [vmem:[%s4680_s6 + $0x110] sm:$0xff]  }
 0x914   :  { %3609 = vmatpush3.bf16.msra.mxu0 %v1549_v53  ;;  %3612 = vmatprep.mubr.msk.bf16.mxu0 %vm3887_vm2, %v3885_v0 }
 0x915   :  { %3610 = vmatprep.subr.bf16.mxu0 %v3885_v0 }
 0x918   :  { %3611 = vmatpush3.bf16.msra.mxu0 %v1537_v58 }
 0x919   :  { %3624 = vmatprep.subr.bf16.mxu0 %v3885_v0 }
 0x91b   :  { %3613 = vmatmul.mubr.msk.bf16.vlgmr.msra.gmra.mxu0 %vm1544_vm7, %v3018_v63 }
 0x91c   :  { %3625 = vmatpush3.bf16.msra.mxu0 %v1549_v53  ;;  %3628 = vmatprep.mubr.msk.bf16.mxu0 %vm3887_vm2, %v3885_v0 }
 0x91d   :  { %3626 = vmatprep.subr.bf16.mxu0 %v3885_v0 }
 0x920   :  { %3627 = vmatpush3.bf16.msra.mxu0 %v1537_v58 }
 0x921   :  { %3640 = vmatprep.subr.bf16.mxu0 %v3885_v0 }
 0x923   :  { %3629 = vmatmul.mubr.msk.bf16.vlgmr.msra.gmra.mxu0 %vm1544_vm7, %v3027_v1 }
 0x924   :  { %3641 = vmatpush3.bf16.msra.mxu0 %v1549_v53  ;;  %3644 = vmatprep.mubr.msk.bf16.mxu0 %vm3887_vm2, %v3885_v0 }
 0x925   :  { %3642 = vmatprep.subr.bf16.mxu0 %v3885_v0 }
 0x928   :  { %3643 = vmatpush3.bf16.msra.mxu0 %v1537_v58 }
 0x929   :  { %3656 = vmatprep.subr.bf16.mxu0 %v3885_v0 }
 0x92b   :  { %3645 = vmatmul.mubr.msk.bf16.vlgmr.msra.gmra.mxu0 %vm1544_vm7, %v3036_v2 }
 0x92c   :  { %3657 = vmatpush3.bf16.msra.mxu0 %v1549_v53  ;;  %3660 = vmatprep.mubr.msk.bf16.mxu0 %vm3887_vm2, %v3885_v0 }
 0x92d   :  { %3658 = vmatprep.subr.bf16.mxu0 %v3885_v0 }
 0x930   :  { %3659 = vmatpush3.bf16.msra.mxu0 %v1537_v58 }
 0x931   :  { %3672 = vmatprep.subr.bf16.mxu0 %v3885_v0 }
 0x933   :  { %3661 = vmatmul.mubr.msk.bf16.vlgmr.msra.gmra.mxu0 %vm1544_vm7, %v3045_v3 }
 0x934   :  { %3673 = vmatpush3.bf16.msra.mxu0 %v1549_v53  ;;  %3676 = vmatprep.mubr.msk.bf16.mxu0 %vm3887_vm2, %v3885_v0 }
 0x935   :  { %3674 = vmatprep.subr.bf16.mxu0 %v3885_v0 }
 0x938   :  { %3675 = vmatpush3.bf16.msra.mxu0 %v1537_v58 }
 0x939   :  { %3688 = vmatprep.subr.bf16.mxu0 %v3885_v0 }
 0x93b   :  { %3677 = vmatmul.mubr.msk.bf16.vlgmr.msra.gmra.mxu0 %vm1544_vm7, %v3054_v5 }
 0x93c   :  { %3689 = vmatpush3.bf16.msra.mxu0 %v1549_v53  ;;  %3692 = vmatprep.mubr.msk.bf16.mxu0 %vm3887_vm2, %v3885_v0 }
 0x93d   :  { %3690 = vmatprep.subr.bf16.mxu0 %v3885_v0 }
 0x940   :  { %3691 = vmatpush3.bf16.msra.mxu0 %v1537_v58 }
 0x941   :  { %3704 = vmatprep.subr.bf16.mxu0 %v3885_v0 }
 0x943   :  { %3693 = vmatmul.mubr.msk.bf16.vlgmr.msra.gmra.mxu0 %vm1544_vm7, %v3063_v6 }
 0x944   :  { %3705 = vmatpush3.bf16.msra.mxu0 %v1549_v53  ;;  %3708 = vmatprep.mubr.msk.bf16.mxu0 %vm3887_vm2, %v3885_v0 }
 0x945   :  { %3706 = vmatprep.subr.bf16.mxu0 %v3885_v0 }
 0x948   :  { %3707 = vmatpush3.bf16.msra.mxu0 %v1537_v58 }
 0x949   :  { %3720 = vmatprep.subr.mxu0 %v3885_v0 }
 0x94b   :  { %3709 = vmatmul.mubr.msk.bf16.vlgmr.msra.gmra.mxu0 %vm1544_vm7, %v3072_v7  ;;  %v2513_v7 = vld [vmem:[%s4683_s7 + $0x18] sm:$0xff] }
 0x94c   :  { %3724 = vmatprep.mubr.msk.f32.mxu0 %vm3887_vm2, %v3885_v0 }
 0x9cb   :  { %v1585_v10 = vpop.f32.mrf.mxu0 }
 0x9cc   :  { %v1591_v12 = vpack.c.bf16 %v1585_v10, %v1585_v10  ;;  %v2516_v10 = vld [vmem:[%s4684_s8 + $0x8] sm:$0x1] }
 0x9cd   :  { %v3582_v14 = vpop.f32.mrf.mxu0  ;;  %3721 = vmatpush3.msk.msra.mxu0 %vm270_vm5, %v2516_v10 }
 0x9ce   :  { %3589 = vmatmul.mubr.msk.bf16.vlgmr.msra.gmra.mxu1 %vm340_vm6, %v1591_v12  ;;  %3722 = vmatprep.subr.mxu0 %v3885_v0  ;;  %v2515_v12 = vld [vmem:[%s4684_s8] sm:$0xff] }
 0x9cf   :  { %v1588_v16 = vpop.f32.mrf.mxu0  ;;  %3601 = vmatpush3.bf16.msra.mxu1 %v3867_v11  ;;  %3604 = vmatprep.mubr.msk.bf16.mxu1 %vm3887_vm2, %v3885_v0  ;;  %v2511_v11 = vld [vmem:[%s4683_s7 + $0x8] sm:$0xff]  ;;  %v2514_v14 = vld [vmem:[%s4685_s1] sm:$0x3] }
 0x9d0   :  { %3602 = vmatprep.subr.bf16.mxu1 %v3885_v0  ;;  %3723 = vmatpush3.msra.mxu0 %v2515_v12  ;;  %v2510_v16 = vld [vmem:[%s4683_s7] sm:$0xff]  ;;  %v2680_v12 = vld [vmem:[%s4686_s9 + $0x18] sm:$0xff] }
 0x9d1   :  { %v3583_v18 = vpop.f32.mrf.mxu0  ;;  %3725 = vmatmul.mubr.msk.f32.vlgmr.msra.gmra.mxu0 %vm2517_vm8, %v2514_v14  ;;  %3738 = vmatprep.subr.mxu0 %v3885_v0 }
 0x9d2   :  { %3770 = vmatprep.mubr.msk.f32.mxu0 %vm3887_vm2, %v3885_v0  ;;  %v4532_v18 = vld [vmem:[%s4686_s9 + $0x70] sm:$0xff] }
 0x9d3   :  { %v1692_v19 = vpop.f32.mrf.mxu0  ;;  %3603 = vmatpush3.bf16.msra.mxu1 %v3868_v17  ;;  %v4527_v17 = vld [vmem:[%s4686_s9 + $0x78] sm:$0xff] }
 0x9d4   :  { %v1698_v20 = vpack.c.bf16 %v1692_v19, %v1692_v19  ;;  %3616 = vmatprep.subr.bf16.mxu1 %v3885_v0  ;;  %3739 = vmatpush3.msra.mxu0 %v4527_v17  ;;  %v4539_v19 = vld [vmem:[%s4686_s9 + $0x68] sm:$0xff] }
 0x9d5   :  { %v3598_v21 = vpop.f32.mrf.mxu0  ;;  %3740 = vmatprep.subr.mxu0 %v3885_v0 }
 0x9d6   :  { %3605 = vmatmul.mubr.msk.bf16.vlgmr.msra.gmra.mxu1 %vm340_vm6, %v1698_v20  ;;  %3741 = vmatpush3.msra.mxu0 %v4532_v18  ;;  %v4553_v20 = vld [vmem:[%s4686_s9 + $0x58] sm:$0xff]  ;;  %v4560_v21 = vld [vmem:[%s4686_s9 + $0x50] sm:$0xff] }
 0x9d7   :  { %v1695_v22 = vpop.f32.mrf.mxu0  ;;  %3617 = vmatpush3.bf16.msra.mxu1 %v3869_v57  ;;  %3620 = vmatprep.mubr.msk.bf16.mxu1 %vm3887_vm2, %v3885_v0  ;;  %v4546_v57 = vld [vmem:[%s4686_s9 + $0x60] sm:$0xff] }
 0x9d8   :  { %3618 = vmatprep.subr.bf16.mxu1 %v3885_v0  ;;  %3742 = vmatprep.subr.mxu0 %v3885_v0  ;;  %v4567_v22 = vld [vmem:[%s4686_s9 + $0x48] sm:$0xff] }
 0x9d9   :  { %v3599_v24 = vpop.f32.mrf.mxu0  ;;  %3743 = vmatpush3.msra.mxu0 %v4539_v19 }
 0x9da   :  { %3744 = vmatprep.subr.mxu0 %v3885_v0  ;;  %v4581_v24 = vld [vmem:[%s4686_s9 + $0x38] sm:$0xff] }
 0x9db   :  { %v1799_v25 = vpop.f32.mrf.mxu0  ;;  %3619 = vmatpush3.bf16.msra.mxu1 %v3870_v23  ;;  %3745 = vmatpush3.msra.mxu0 %v4546_v57  ;;  %v4574_v23 = vld [vmem:[%s4686_s9 + $0x40] sm:$0xff] }
 0x9dc   :  { %v1805_v28 = vpack.c.bf16 %v1799_v25, %v1799_v25  ;;  %3632 = vmatprep.subr.bf16.mxu1 %v3885_v0  ;;  %3746 = vmatprep.subr.mxu0 %v3885_v0  ;;  %v4588_v25 = vld [vmem:[%s4686_s9 + $0x30] sm:$0xff] }
 0x9dd   :  { %v3614_v29 = vpop.f32.mrf.mxu0  ;;  %3747 = vmatpush3.msra.mxu0 %v4553_v20 }
 0x9de   :  { %3621 = vmatmul.mubr.msk.bf16.vlgmr.msra.gmra.mxu1 %vm340_vm6, %v1805_v28  ;;  %3748 = vmatprep.subr.mxu0 %v3885_v0  ;;  %v4602_v28 = vld [vmem:[%s4686_s9 + $0x20] sm:$0xff] }
 0x9df   :  { %v1802_v30 = vpop.f32.mrf.mxu0  ;;  %3633 = vmatpush3.bf16.msra.mxu1 %v3871_v27  ;;  %3636 = vmatprep.mubr.msk.bf16.mxu1 %vm3887_vm2, %v3885_v0  ;;  %v4595_v27 = vld [vmem:[%s4686_s9 + $0x28] sm:$0xff] }
 0x9e0   :  { %3634 = vmatprep.subr.bf16.mxu1 %v3885_v0  ;;  %3749 = vmatpush3.msra.mxu0 %v4560_v21 }
 0x9e1   :  { %v3615_v32 = vpop.f32.mrf.mxu0  ;;  %3750 = vmatprep.subr.mxu0 %v3885_v0 }
 0x9e2   :  { %3751 = vmatpush3.msra.mxu0 %v4567_v22 }
 0x9e3   :  { %v1906_v33 = vpop.f32.mrf.mxu0  ;;  %3635 = vmatpush3.bf16.msra.mxu1 %v3872_v31  ;;  %3752 = vmatprep.subr.mxu0 %v3885_v0 }
 0x9e4   :  { %v1912_v61 = vpack.c.bf16 %v1906_v33, %v1906_v33  ;;  %3648 = vmatprep.subr.bf16.mxu1 %v3885_v0  ;;  %3753 = vmatpush3.msra.mxu0 %v4574_v23 }
 0x9e5   :  { %v3630_v62 = vpop.f32.mrf.mxu0  ;;  %3754 = vmatprep.subr.mxu0 %v3885_v0 }
 0x9e6   :  { %3637 = vmatmul.mubr.msk.bf16.vlgmr.msra.gmra.mxu1 %vm340_vm6, %v1912_v61  ;;  %3755 = vmatpush3.msra.mxu0 %v4581_v24 }
 0x9e7   :  { %v1909_v4 = vpop.f32.mrf.mxu0  ;;  %3649 = vmatpush3.bf16.msra.mxu1 %v3873_v34  ;;  %3652 = vmatprep.mubr.msk.bf16.mxu1 %vm3887_vm2, %v3885_v0 }
 0x9e8   :  { %3650 = vmatprep.subr.bf16.mxu1 %v3885_v0  ;;  %3756 = vmatprep.subr.mxu0 %v3885_v0 }
 0x9e9   :  { %v3631_v9 = vpop.f32.mrf.mxu0  ;;  %3757 = vmatpush3.msra.mxu0 %v4588_v25 }
 0x9ea   :  { %3758 = vmatprep.subr.mxu0 %v3885_v0 }
 0x9eb   :  { %v2013_v13 = vpop.f32.mrf.mxu0  ;;  %3651 = vmatpush3.bf16.msra.mxu1 %v3874_v26  ;;  %3759 = vmatpush3.msra.mxu0 %v4595_v27 }
 0x9ec   :  { %v2019_v35 = vpack.c.bf16 %v2013_v13, %v2013_v13  ;;  %3664 = vmatprep.subr.bf16.mxu1 %v3885_v0  ;;  %3760 = vmatprep.subr.mxu0 %v3885_v0 }
 0x9ed   :  { %v3646_v36 = vpop.f32.mrf.mxu0  ;;  %3761 = vmatpush3.msra.mxu0 %v4602_v28 }
 0x9ee   :  { %3653 = vmatmul.mubr.msk.bf16.vlgmr.msra.gmra.mxu1 %vm340_vm6, %v2019_v35  ;;  %3762 = vmatprep.subr.mxu0 %v3885_v0 }
 0x9ef   :  { %v2016_v37 = vpop.f32.mrf.mxu0  ;;  %3665 = vmatpush3.bf16.msra.mxu1 %v3875_v15  ;;  %3668 = vmatprep.mubr.msk.bf16.mxu1 %vm3887_vm2, %v3885_v0 }
 0x9f0   :  { %3666 = vmatprep.subr.bf16.mxu1 %v3885_v0  ;;  %3763 = vmatpush3.msra.mxu0 %v2680_v12 }
 0x9f1   :  { %v3647_v39 = vpop.f32.mrf.mxu0  ;;  %3764 = vmatprep.subr.mxu0 %v3885_v0 }
 0x9f3   :  { %v2120_v40 = vpop.f32.mrf.mxu0  ;;  %3667 = vmatpush3.bf16.msra.mxu1 %v3876_v38 }
 0x9f4   :  { %v2126_v42 = vpack.c.bf16 %v2120_v40, %v2120_v40  ;;  %3680 = vmatprep.subr.bf16.mxu1 %v3885_v0 }
 0x9f5   :  { %v3662_v43 = vpop.f32.mrf.mxu0 }
 0x9f6   :  { %3669 = vmatmul.mubr.msk.bf16.vlgmr.msra.gmra.mxu1 %vm340_vm6, %v2126_v42 }
 0x9f7   :  { %v2123_v44 = vpop.f32.mrf.mxu0  ;;  %3681 = vmatpush3.bf16.msra.mxu1 %v3877_v41  ;;  %3684 = vmatprep.mubr.msk.bf16.mxu1 %vm3887_vm2, %v3885_v0 }
 0x9f8   :  { %3682 = vmatprep.subr.bf16.mxu1 %v3885_v0 }
 0x9f9   :  { %v3663_v46 = vpop.f32.mrf.mxu0 }
 0x9fb   :  { %v2227_v47 = vpop.f32.mrf.mxu0  ;;  %3683 = vmatpush3.bf16.msra.mxu1 %v3878_v45  ;;  %v3000_v45 = vld [vmem:[%s4681_s10 + $0x2] ss:$0 sm:$0xff] }
 0x9fc   :  { %v2233_v49 = vpack.c.bf16 %v2227_v47, %v2227_v47  ;;  %3696 = vmatprep.subr.bf16.mxu1 %v3885_v0 }
 0x9fd   :  { %v3678_v50 = vpop.f32.mrf.mxu0 }
 0x9fe   :  { %3685 = vmatmul.mubr.msk.bf16.vlgmr.msra.gmra.mxu1 %vm340_vm6, %v2233_v49 }
 0x9ff   :  { %v2230_v51 = vpop.f32.mrf.mxu0  ;;  %3697 = vmatpush3.bf16.msra.mxu1 %v3879_v48  ;;  %3700 = vmatprep.mubr.msk.bf16.mxu1 %vm3887_vm2, %v3885_v0 }
 0xa00   :  { %3698 = vmatprep.subr.bf16.mxu1 %v3885_v0 }
 0xa01   :  { %v3679_v53 = vpop.f32.mrf.mxu0 }
 0xa03   :  { %v2334_v54 = vpop.f32.mrf.mxu0  ;;  %3699 = vmatpush3.bf16.msra.mxu1 %v3880_v52 }
 0xa04   :  { %v2340_v56 = vpack.c.bf16 %v2334_v54, %v2334_v54  ;;  %3712 = vmatprep.subr.bf16.mxu1 %v3885_v0 }
 0xa05   :  { %v3694_v58 = vpop.f32.mrf.mxu0 }
 0xa06   :  { %3701 = vmatmul.mubr.msk.bf16.vlgmr.msra.gmra.mxu1 %vm340_vm6, %v2340_v56 }
 0xa07   :  { %v2337_v59 = vpop.f32.mrf.mxu0  ;;  %3713 = vmatpush3.bf16.msra.mxu1 %v3881_v55  ;;  %3716 = vmatprep.mubr.msk.bf16.mxu1 %vm3887_vm2, %v3885_v0 }
 0xa08   :  { %3714 = vmatprep.subr.bf16.mxu1 %v3885_v0 }
 0xa09   :  { %v3695_v63 = vpop.f32.mrf.mxu0 }
 0xa0b   :  { %v2441_v1 = vpop.f32.mrf.mxu0  ;;  %3715 = vmatpush3.bf16.msra.mxu1 %v3882_v60 }
 0xa0c   :  { %v2447_v2 = vpack.c.bf16 %v2441_v1, %v2441_v1  ;;  %3727 = vmatprep.subr.mxu1 %v3885_v0 }
 0xa0d   :  { %v3710_v3 = vpop.f32.mrf.mxu0 }
 0xa0e   :  { %3717 = vmatmul.mubr.msk.bf16.vlgmr.msra.gmra.mxu1 %vm340_vm6, %v2447_v2 }
 0xa0f   :  { %v2444_v5 = vpop.f32.mrf.mxu0  ;;  %3735 = vmatprep.mubr.msk.f32.mxu1 %vm3887_vm2, %v3885_v0  ;;  %3728 = vmatpush3.msra.mxu1 %v2513_v7 }
 0xa10   :  { %3729 = vmatprep.subr.mxu1 %v3885_v0 }
 0xa11   :  { %v3711_v6 = vpop.f32.mrf.mxu0  ;;  %3730 = vmatpush3.msra.mxu1 %v2512_v8 }
 0xa12   :  { %3731 = vmatprep.subr.mxu1 %v3885_v0 }
 0xa13   :  { %3732 = vmatpush3.msra.mxu1 %v2511_v11 }
 0xa14   :  { %3733 = vmatprep.subr.mxu1 %v3885_v0 }
 0xa15   :  { %3734 = vmatpush3.msra.mxu1 %v2510_v16  ;;  %v2679_v16 = vld [vmem:[%s4686_s9 + $0x10] sm:$0xff] }
 0xa16   :  { %3773 = vmatprep.subr.mxu1 %v3885_v0  ;;  %3765 = vmatpush3.msra.mxu0 %v2679_v16 }
 0xa17   :  { %3766 = vmatprep.subr.mxu0 %v3885_v0 }
 0xa8e   :  { %v1646_v29 = vpop.f32.mrf.mxu1 }
 0xa8f   :  { %v1652_v48 = vadd.f32 %v3000_v45, %v1646_v29  ;;  %v2848_v29 = vld [vmem:[%s4687_s2] sm:$0x3] }
 0xa90   :  { %v3590_v30 = vpop.f32.mrf.mxu1  ;;  %2849 = vst [vmem:[%s4688_s11 + $0x2] sm:$0x3] %v2848_v29 }
 0xa91   :  { %v2590_v11 = vpop.f32.mrf.mxu0 }
 0xa92   :  { %v1649_v31 = vpop.f32.mrf.mxu1 }
 0xa93   :  { %v3726_v14 = vpop.f32.mrf.mxu0 }
 0xa94   :  { %v3591_v32 = vpop.f32.mrf.mxu1 }
 0xa96   :  { %v1753_v33 = vpop.f32.mrf.mxu1 }
 0xa97   :  { %v1759_v50 = vadd.f32 %v1753_v33, %v1652_v48 }
 0xa98   :  { %v3606_v34 = vpop.f32.mrf.mxu1 }
 0xa99   :  { %v3086_v34 = vld [vmem:[%s4681_s10 + $0x4] ss:$0 sm:$0xff] }
 0xa9a   :  { %v1756_v61 = vpop.f32.mrf.mxu1 }
 0xa9c   :  { %v3607_v62 = vpop.f32.mrf.mxu1 }
 0xa9d   :  { %v3087_v62 = vld [vmem:[%s4681_s10 + $0x5] ss:$0 sm:$0xff] }
 0xa9e   :  { %v1860_v4 = vpop.f32.mrf.mxu1 }
 0xa9f   :  { %v1866_v52 = vadd.f32 %v1860_v4, %v1759_v50 }
 0xaa0   :  { %v3622_v26 = vpop.f32.mrf.mxu1 }
 0xaa2   :  { %v1863_v9 = vpop.f32.mrf.mxu1 }
 0xaa4   :  { %v3623_v13 = vpop.f32.mrf.mxu1 }
 0xaa6   :  { %v1967_v15 = vpop.f32.mrf.mxu1 }
 0xaa7   :  { %v1973_v54 = vadd.f32 %v1967_v15, %v1866_v52 }
 0xaa8   :  { %v3638_v35 = vpop.f32.mrf.mxu1 }
 0xaaa   :  { %v1970_v36 = vpop.f32.mrf.mxu1 }
 0xaac   :  { %v3639_v37 = vpop.f32.mrf.mxu1 }
 0xaae   :  { %v2074_v38 = vpop.f32.mrf.mxu1 }
 0xaaf   :  { %v2080_v56 = vadd.f32 %v2074_v38, %v1973_v54 }
 0xab0   :  { %v3654_v39 = vpop.f32.mrf.mxu1 }
 0xab2   :  { %v2077_v40 = vpop.f32.mrf.mxu1 }
 0xab4   :  { %v3655_v41 = vpop.f32.mrf.mxu1 }
 0xab6   :  { %v2181_v42 = vpop.f32.mrf.mxu1 }
 0xab7   :  { %v2187_v59 = vadd.f32 %v2181_v42, %v2080_v56 }
 0xab8   :  { %v3670_v43 = vpop.f32.mrf.mxu1 }
 0xaba   :  { %v2184_v44 = vpop.f32.mrf.mxu1 }
 0xabc   :  { %v3671_v46 = vpop.f32.mrf.mxu1 }
 0xabe   :  { %v2288_v47 = vpop.f32.mrf.mxu1 }
 0xabf   :  { %v2294_v63 = vadd.f32 %v2288_v47, %v2187_v59 }
 0xac0   :  { %v3686_v49 = vpop.f32.mrf.mxu1 }
 0xac2   :  { %v2291_v51 = vpop.f32.mrf.mxu1 }
 0xac4   :  { %v3687_v53 = vpop.f32.mrf.mxu1 }
 0xac6   :  { %v2395_v55 = vpop.f32.mrf.mxu1 }
 0xac7   :  { %v2401_v2 = vadd.f32 %v2395_v55, %v2294_v63 }
 0xac8   :  { %v3702_v58 = vpop.f32.mrf.mxu1 }
 0xaca   :  { %v2398_v60 = vpop.f32.mrf.mxu1 }
 0xacc   :  { %v3703_v1 = vpop.f32.mrf.mxu1 }
 0xace   :  { %v2502_v3 = vpop.f32.mrf.mxu1 }
 0xacf   :  { %v2508_v5 = vadd.f32 %v2502_v3, %v2401_v2 }
 0xad0   :  { %v3718_v6 = vpop.f32.mrf.mxu1 }
 0xad1   :  { %v2509_v7 = vmax.f32 %v2508_v5, 0.0 }
 0xad2   :  { %v2505_v8 = vpop.f32.mrf.mxu1 }
 0xad3   :  { %3736 = vmatmul.mubr.msk.f32.vlgmr.msra.gmra.mxu1 %vm340_vm6, %v2509_v7 }
 0xad4   :  { %v3719_v10 = vpop.f32.mrf.mxu1  ;;  %3774 = vmatpush3.msra.mxu1 %v4527_v17  ;;  %3805 = vmatprep.mubr.msk.f32.mxu1 %vm3887_vm2, %v3885_v0  ;;  %v2678_v17 = vld [vmem:[%s4686_s9 + $0x8] sm:$0xff] }
 0xad5   :  { %3775 = vmatprep.subr.mxu1 %v3885_v0  ;;  %3767 = vmatpush3.msra.mxu0 %v2678_v17 }
 0xad6   :  { %3776 = vmatpush3.msra.mxu1 %v4532_v18  ;;  %3768 = vmatprep.subr.mxu0 %v3885_v0  ;;  %v2677_v18 = vld [vmem:[%s4686_s9] sm:$0xff] }
 0xad7   :  { %3777 = vmatprep.subr.mxu1 %v3885_v0  ;;  %3769 = vmatpush3.msra.mxu0 %v2677_v18 }
 0xad8   :  { %3778 = vmatpush3.msra.mxu1 %v4539_v19  ;;  %v3084_v19 = vld [vmem:[%s4681_s10 + $0x3] ss:$0 sm:$0xff] }
 0xad9   :  { %3779 = vmatprep.subr.mxu1 %v3885_v0 }
 0xada   :  { %3780 = vmatpush3.msra.mxu1 %v4546_v57 }
 0xadb   :  { %3781 = vmatprep.subr.mxu1 %v3885_v0 }
 0xadc   :  { %3782 = vmatpush3.msra.mxu1 %v4553_v20 }
 0xadd   :  { %3783 = vmatprep.subr.mxu1 %v3885_v0 }
 0xade   :  { %3784 = vmatpush3.msra.mxu1 %v4560_v21  ;;  %v3085_v21 = vld [vmem:[%s4681_s10 + $0x6] ss:$0 sm:$0xff] }
 0xadf   :  { %3785 = vmatprep.subr.mxu1 %v3885_v0 }
 0xae0   :  { %3786 = vmatpush3.msra.mxu1 %v4567_v22 }
 0xae1   :  { %3787 = vmatprep.subr.mxu1 %v3885_v0 }
 0xae2   :  { %3788 = vmatpush3.msra.mxu1 %v4574_v23 }
 0xae3   :  { %3789 = vmatprep.subr.mxu1 %v3885_v0 }
 0xae4   :  { %3790 = vmatpush3.msra.mxu1 %v4581_v24 }
 0xae5   :  { %3791 = vmatprep.subr.mxu1 %v3885_v0 }
 0xae6   :  { %3792 = vmatpush3.msra.mxu1 %v4588_v25 }
 0xae7   :  { %3793 = vmatprep.subr.mxu1 %v3885_v0 }
 0xae8   :  { %3794 = vmatpush3.msra.mxu1 %v4595_v27 }
 0xae9   :  { %3795 = vmatprep.subr.mxu1 %v3885_v0 }
 0xaea   :  { %3796 = vmatpush3.msra.mxu1 %v4602_v28 }
 0xaeb   :  { %3797 = vmatprep.subr.mxu1 %v3885_v0 }
 0xaec   :  { %3798 = vmatpush3.msra.mxu1 %v2680_v12 }
 0xaed   :  { %3799 = vmatprep.subr.mxu1 %v3885_v0 }
 0xaee   :  { %3800 = vmatpush3.msra.mxu1 %v2679_v16 }
 0xaef   :  { %3801 = vmatprep.subr.mxu1 %v3885_v0 }
 0xaf0   :  { %3802 = vmatpush3.msra.mxu1 %v2678_v17 }
 0xaf1   :  { %3803 = vmatprep.subr.mxu1 %v3885_v0 }
 0xaf2   :  { %3804 = vmatpush3.msra.mxu1 %v2677_v18 }
 0xb93   :  { %v2663_v57 = vpop.f32.mrf.mxu1 }
 0xb94   :  { %v2664_v20 = vadd.f32 %v2663_v57, %v2590_v11 }
 0xb95   :  { %v3737_v22 = vpop.f32.mrf.mxu1 }
 0xb96   :  { %v2671_v23 = vadd.f32 %v3084_v19, %v2664_v20 }
 0xb98   :  { %v2676_v24 = vmax.f32 %v2671_v23, %v3085_v21 }
 0xb9a   :  { %3771 = vmatmul.mubr.f32.vlgmr.msra.gmra.mxu0 %v2676_v24 }
 0xc5a   :  { %v2759_v25 = vpop.f32.mrf.mxu0 }
 0xc5b   :  { %v2763_v27 = vsub.f32 %v2676_v24, %v2759_v25 }
 0xc5c   :  { %v3772_v28 = vpop.f32.mrf.mxu0 }
 0xc5d   :  { %v2764_v0 = vmul.f32 %v2763_v27, %v2763_v27 }
 0xc5f   :  { %3806 = vmatmul.mubr.f32.vlgmr.msra.gmra.mxu1 %v2764_v0 }
 0xd1f   :  { %v2831_v30 = vpop.f32.mrf.mxu1 }
 0xd20   :  { %v2832_v31 = vadd.f32 1e-05, %v2831_v30 }
 0xd21   :  { %v3807_v32 = vpop.f32.mrf.mxu1 }
 0xd22   :  { %3883 = vrsqrt.f32 %v2832_v31 }
 0xd2f   :  { %v3884_v33 = vpop.eup %3883 }
 0xd30   :  { %v2836_v61 = vmul.f32 %v3884_v33, %v2763_v27 }
 0xd32   :  { %v2841_v4 = vmul.f32 %v3086_v34, %v2836_v61 }
 0xd34   :  { %v2846_v26 = vadd.f32 %v3087_v62, %v2841_v4 }
 0xd36   :  { %2847 = vst [vmem:[%s4688_s11] sm:$0x3] %v2846_v26 }

</bundles_post_ra>
